<compile_context>
chip_gen: v5e
topology: v5e:2x2
jax: 0.10.0
libtpu: 0.0.40
codegen_flags: <defaults>
</compile_context>

<pallas_src>
import math

import numpy as np
import jax
import jax.numpy as jnp
from jax.experimental import pallas as pl
from jax.experimental.pallas import tpu as pltpu

STATE_DIM = 32
NUM_RBF = 20
NUM_ATOM_TYPES = 5
NUM_ROUNDS = 4
R_CUT = 5.0
FEAT_DIM = NUM_RBF + 1 + 3 + 1            # [rbf*cutoff(20) | cutoff(1) | ev(3) | one(1)]

E_TILE_MAX = 2048                          # per review: big tiles, still v5e-safe
N_TILE_MAX = 256

GP_IDX = [
    [0, 1, 2, 3, 4, 5, 6, 7],
    [1, 0, 4, 14, 2, 7, 11, 5],
    [2, 12, 0, 5, 9, 3, 7, 6],
    [3, 6, 13, 0, 7, 10, 1, 4],
    [4, 10, 1, 7, 8, 14, 5, 11],
    [5, 7, 11, 2, 6, 8, 12, 9],
    [6, 3, 7, 9, 13, 4, 8, 10],
    [7, 5, 6, 4, 11, 9, 10, 8],
]
W_IDX = [
    [0, 1, 1, 1, 2, 2, 2, 3],
    [4, 5, 6, 6, 7, 8, 7, 9],
    [4, 6, 5, 6, 7, 7, 8, 9],
    [4, 6, 6, 5, 8, 7, 7, 9],
    [10, 11, 11, 12, 13, 14, 14, 15],
    [10, 12, 11, 11, 14, 13, 14, 15],
    [10, 11, 12, 11, 14, 14, 13, 15],
    [16, 17, 17, 17, 18, 18, 18, 19],
]


def _build_gp_maps():
    """For each (output channel ch, first-operand channel i) there is exactly one
    second-operand channel j (gp_idx rows mod 8 are permutations).  Returns that
    j-map plus the sign and weight-row index of the term."""
    jmap = np.zeros((8, 8), np.int32)
    sgn = np.zeros((8, 8), np.float32)
    wrow = np.zeros((8, 8), np.int32)
    for i in range(8):
        for j in range(8):
            t = GP_IDX[i][j]
            ch = t % 8
            jmap[ch, i] = j
            sgn[ch, i] = 1.0 if t < 8 else -1.0
            wrow[ch, i] = W_IDX[i][j]
    return jmap, sgn, wrow


_JMAP, _SGN, _WROW = _build_gp_maps()


def _mm(a, b):
    """bf16 MXU matmul with f32 accumulation."""
    return jnp.dot(a.astype(jnp.bfloat16), b.astype(jnp.bfloat16),
                   preferred_element_type=jnp.float32)


# ----------------------------------------------------------------------------
# Pallas kernels
# ----------------------------------------------------------------------------
def edge_kernel(feat_ref, send_ref, rw_ref, pw1_ref, pb1_ref, pw2_ref, pb2_ref,
                selm_ref, sela_ref, selev_ref, msg_ref):
    """Per-edge gated messages, lane-dense packed (Et, 8*D) bf16 output."""
    D = STATE_DIM
    feat = feat_ref[...]                                # (Et, 25) f32
    send = send_ref[...].astype(jnp.float32)            # (Et, 8D)
    s0 = send[:, :D]                                    # sender scalar channel

    # shared_phi: Linear(D,5D) -> SiLU -> Linear(5D,5D)
    h = _mm(s0, pw1_ref[...]) + pb1_ref[...]
    h = h * jax.nn.sigmoid(h)
    phi = _mm(h, pw2_ref[...]) + pb2_ref[...]           # (Et, 5D)

    # shared_rbf * cutoff: cutoff + bias folded into augmented feat @ rw_aug
    # (ev / one columns hit zero weight rows).
    rbf_out = _mm(feat, rw_ref[...])                    # (Et, 5D)
    gated = phi * rbf_out

    # Lane-dense epilogue: place gates into packed channel layout via constant
    # 0/1 selection matmuls, then two full-width FMAs.
    g_mul = _mm(gated, selm_ref[...])                   # (Et, 8D): [0|gv gv gv|gb gb gb|gt]
    g_add = _mm(gated, sela_ref[...])                   # (Et, 8D): [gs|gd gd gd|0 0 0 0]
    evx = _mm(feat, selev_ref[...])                     # (Et, 8D): [1 |ev0 ev1 ev2|0 0 0 0]
    msg_ref[...] = (g_mul * send + g_add * evx).astype(msg_ref.dtype)


def _node_body(state_ref, onehot_ref, wuv_ref, wua_ref, wvb1_ref, wz1_ref,
               wz1b2_ref, wz2_ref, uw1_ref, ub1_ref, uw2_ref, ub2_ref,
               esel_ref, asel_ref):
    """Node update: packed U/V, folded-permutation GP products, fused per-type MLPs."""
    D = STATE_DIM
    s = state_ref[...]                                  # (Nt, 8D) f32
    sb = s.astype(jnp.bfloat16)

    UV = jnp.dot(sb, wuv_ref[...], preferred_element_type=jnp.float32)   # (Nt, 16D)
    U_pk = UV[:, :8 * D]

    # Geometric products as 8 aligned full-width FMAs:
    #   atile  block(i,ch) = U[i]
    #   bperm1 block(i,ch) = sgn(ch,i)*W1[wrow(ch,i)] * V[jmap(ch,i)]
    #   bperm2 block(i,ch) = sgn(ch,i)*W2[wrow(ch,i)] * Z1l[jmap(ch,i)]
    atile = jnp.dot(sb, wua_ref[...], preferred_element_type=jnp.float32)    # (Nt, 64D)
    bperm1 = jnp.dot(sb, wvb1_ref[...], preferred_element_type=jnp.float32)  # (Nt, 64D)

    def gp_accum(a_all, b_all):
        acc = None
        for i in range(8):
            sl = slice(i * 8 * D, (i + 1) * 8 * D)       # 256-lane aligned slices
            term = a_all[:, sl] * b_all[:, sl]
            acc = term if acc is None else acc + term
        return acc                                        # (Nt, 8D)

    Z1 = gp_accum(atile, bperm1)
    z1b = Z1.astype(jnp.bfloat16)
    Z1l = jnp.dot(z1b, wz1_ref[...], preferred_element_type=jnp.float32)     # block-diag gp_linear_Z1
    bperm2 = jnp.dot(z1b, wz1b2_ref[...], preferred_element_type=jnp.float32)
    Z2 = gp_accum(atile, bperm2)
    Z2l = _mm(Z2, wz2_ref[...])                                              # block-diag gp_linear_Z2

    vx = UV[:, 9 * D:10 * D]
    vy = UV[:, 10 * D:11 * D]
    vz = UV[:, 11 * D:12 * D]
    v_norm = jnp.sqrt(vx * vx + vy * vy + vz * vz)        # (Nt, D)
    ui = jnp.concatenate([s[:, :D], v_norm], axis=-1)     # (Nt, 2D)

    # per-atom-type update MLPs, fused across types
    h = _mm(ui, uw1_ref[...]) + ub1_ref[...]              # (Nt, T*4D)
    h = h * jax.nn.sigmoid(h)
    onehot = onehot_ref[...]                              # (Nt, T)
    mask = _mm(onehot, esel_ref[...])                     # (Nt, T*4D) exact 0/1
    a = _mm(mask * h, uw2_ref[...]) + jnp.dot(onehot, ub2_ref[...],
                                              preferred_element_type=jnp.float32)
    a_exp = _mm(a, asel_ref[...])                         # (Nt, 8D): [a_s,a_v,a_v,a_v,a_b,a_b,a_b,a_t]

    comb = U_pk + Z1l + Z2l
    return s + a_exp * comb


def node_kernel(state_ref, onehot_ref, wuv_ref, wua_ref, wvb1_ref, wz1_ref,
                wz1b2_ref, wz2_ref, uw1_ref, ub1_ref, uw2_ref, ub2_ref,
                esel_ref, asel_ref, out_ref):
    out_ref[...] = _node_body(state_ref, onehot_ref, wuv_ref, wua_ref, wvb1_ref,
                              wz1_ref, wz1b2_ref, wz2_ref, uw1_ref, ub1_ref,
                              uw2_ref, ub2_ref, esel_ref, asel_ref)


def node_readout_kernel(state_ref, onehot_ref, wuv_ref, wua_ref, wvb1_ref, wz1_ref,
                        wz1b2_ref, wz2_ref, uw1_ref, ub1_ref, uw2_ref, ub2_ref,
                        esel_ref, asel_ref, rw1_ref, rb1_ref, rw2_ref, rb2_ref,
                        out_ref, ro_ref):
    """Last-round node update with the scalar readout fused in."""
    new_state = _node_body(state_ref, onehot_ref, wuv_ref, wua_ref, wvb1_ref,
                           wz1_ref, wz1b2_ref, wz2_ref, uw1_ref, ub1_ref,
                           uw2_ref, ub2_ref, esel_ref, asel_ref)
    out_ref[...] = new_state
    h = _mm(new_state[:, :STATE_DIM], rw1_ref[...]) + rb1_ref[...]
    h = h * jax.nn.sigmoid(h)
    ro_ref[...] = jnp.sum(h * rw2_ref[...], axis=-1, keepdims=True) + rb2_ref[...]


# ----------------------------------------------------------------------------
# pallas_call plumbing
# ----------------------------------------------------------------------------
def _tile2(block_shape):
    return pl.BlockSpec(block_shape, lambda i: (i, 0))


def _rep2(shape):
    return pl.BlockSpec(shape, lambda i: (0, 0))


_CPARAMS = pltpu.CompilerParams(
    dimension_semantics=("parallel",),
    vmem_limit_bytes=64 * 1024 * 1024,
)


def edge_messages(p, consts, feat, send, e_tile):
    D = STATE_DIM
    E_pad = feat.shape[0]
    args = (feat, send, p["rw_aug"], p["pw1"], p["pb1"], p["pw2"], p["pb2"],
            consts["sel_mul"], consts["sel_add"], consts["sel_evx"])
    in_specs = ([_tile2((e_tile, feat.shape[1])), _tile2((e_tile, 8 * D))]
                + [_rep2(a.shape) for a in args[2:]])
    return pl.pallas_call(
        edge_kernel,
        grid=(E_pad // e_tile,),
        in_specs=in_specs,
        out_specs=_tile2((e_tile, 8 * D)),
        out_shape=jax.ShapeDtypeStruct((E_pad, 8 * D), jnp.bfloat16),
        compiler_params=_CPARAMS,
    )(*args)


def node_update(p, consts, ro, state, onehot, n_tile, with_readout):
    D = STATE_DIM
    N_pad = state.shape[0]
    args = [state, onehot, p["wuv"], p["wua"], p["wvb1"], p["wz1"], p["wz1b2"],
            p["wz2"], p["uw1"], p["ub1"], p["uw2"], p["ub2"],
            consts["esel"], consts["asel"]]
    if with_readout:
        args += [ro["w1"], ro["b1"], ro["w2"], ro["b2"]]
    in_specs = ([_tile2((n_tile, 8 * D)), _tile2((n_tile, onehot.shape[1]))]
                + [_rep2(a.shape) for a in args[2:]])
    state_spec = _tile2((n_tile, 8 * D))
    state_shape = jax.ShapeDtypeStruct((N_pad, 8 * D), jnp.float32)
    if with_readout:
        kernel = node_readout_kernel
        out_specs = [state_spec, _tile2((n_tile, 1))]
        out_shape = (state_shape, jax.ShapeDtypeStruct((N_pad, 1), jnp.float32))
    else:
        kernel = node_kernel
        out_specs = state_spec
        out_shape = state_shape
    return pl.pallas_call(
        kernel,
        grid=(N_pad // n_tile,),
        in_specs=in_specs,
        out_specs=out_specs,
        out_shape=out_shape,
        compiler_params=_CPARAMS,
    )(*args)


# ----------------------------------------------------------------------------
# Constant-matrix builders (folded GP permutations / selections)
# ----------------------------------------------------------------------------
def _fold_first_operand(w_lin):
    """(8D, 64D): column block (i, ch) = w_lin applied to state channel i (for all ch)."""
    D = STATE_DIM
    w = np.asarray(w_lin, np.float32)
    m = np.zeros((8 * D, 64 * D), np.float32)
    for i in range(8):
        for ch in range(8):
            c0 = (i * 8 + ch) * D
            m[i * D:(i + 1) * D, c0:c0 + D] = w
    return m


def _fold_second_operand(w_lin, gp_w):
    """(8D, 64D): column block (i, ch) = (input channel jmap[ch,i]) @ w_lin,
    columns scaled by sgn(ch,i) * gp_w[wrow(ch,i)]."""
    D = STATE_DIM
    w = np.asarray(w_lin, np.float32)
    gw = np.asarray(gp_w, np.float32)
    m = np.zeros((8 * D, 64 * D), np.float32)
    for i in range(8):
        for ch in range(8):
            j = int(_JMAP[ch, i])
            scale = _SGN[ch, i] * gw[int(_WROW[ch, i])]          # (D,)
            c0 = (i * 8 + ch) * D
            m[j * D:(j + 1) * D, c0:c0 + D] = w * scale[None, :]
    return m


def _edge_selectors():
    D = STATE_DIM
    eye = np.eye(D, dtype=np.float32)
    sel_mul = np.zeros((5 * D, 8 * D), np.float32)
    for k in range(3):
        sel_mul[1 * D:2 * D, (1 + k) * D:(2 + k) * D] = eye       # g_v -> channels 1..3
        sel_mul[3 * D:4 * D, (4 + k) * D:(5 + k) * D] = eye       # g_b -> channels 4..6
    sel_mul[4 * D:5 * D, 7 * D:8 * D] = eye                       # g_t -> channel 7
    sel_add = np.zeros((5 * D, 8 * D), np.float32)
    sel_add[0:D, 0:D] = eye                                       # g_s -> channel 0
    for k in range(3):
        sel_add[2 * D:3 * D, (1 + k) * D:(2 + k) * D] = eye       # g_d -> channels 1..3
    sel_evx = np.zeros((FEAT_DIM, 8 * D), np.float32)
    sel_evx[FEAT_DIM - 1, 0:D] = 1.0                              # ones -> channel 0
    for k in range(3):
        sel_evx[NUM_RBF + 1 + k, (1 + k) * D:(2 + k) * D] = 1.0   # ev_k -> channel 1+k
    return sel_mul, sel_add, sel_evx


# ----------------------------------------------------------------------------
# Parameter init (fused / packed layouts, bf16 matmul weights)
# ----------------------------------------------------------------------------
def init_params(key):
    D, R, T = STATE_DIM, NUM_RBF, NUM_ATOM_TYPES
    keys = iter(jax.random.split(key, 512))

    def nrm(shape, scale):
        return jax.random.normal(next(keys), shape, jnp.float32) * scale

    eye8 = jnp.eye(8, dtype=jnp.float32)

    def bdiag(w):
        return jnp.kron(eye8, w)

    params = {
        "emb_scalar": nrm((T, D), 1.0),
        "emb_tri": nrm((T, D), 1.0),
    }

    rounds = []
    for _ in range(NUM_ROUNDS):
        p = {}
        # edge MLPs -----------------------------------------------------------
        rw = nrm((R, 5 * D), 1.0 / math.sqrt(R))
        rb = nrm((1, 5 * D), 0.1)
        # augmented feat @ [rw ; rb ; 0] == (rbf @ rw + rb) * cutoff
        p["rw_aug"] = jnp.concatenate(
            [rw, rb, jnp.zeros((FEAT_DIM - R - 1, 5 * D), jnp.float32)],
            axis=0).astype(jnp.bfloat16)                                   # (25, 5D)
        p["pw1"] = nrm((D, 5 * D), 1.0 / math.sqrt(D)).astype(jnp.bfloat16)
        p["pb1"] = nrm((1, 5 * D), 0.1)
        p["pw2"] = nrm((5 * D, 5 * D), 1.0 / math.sqrt(5 * D)).astype(jnp.bfloat16)
        p["pb2"] = nrm((1, 5 * D), 0.1)

        # node update ---------------------------------------------------------
        wu = nrm((D, D), 1.0 / math.sqrt(D))
        wv = nrm((D, D), 1.0 / math.sqrt(D))
        wz1r = nrm((D, D), 1.0 / math.sqrt(D))
        wz2r = nrm((D, D), 1.0 / math.sqrt(D))
        w1 = nrm((20, D), 1.0 / math.sqrt(8.0))
        w2 = nrm((20, D), 1.0 / math.sqrt(8.0))

        p["wuv"] = jnp.concatenate([bdiag(wu), bdiag(wv)], axis=1).astype(jnp.bfloat16)
        p["wua"] = jnp.asarray(_fold_first_operand(wu)).astype(jnp.bfloat16)       # (8D, 64D)
        p["wvb1"] = jnp.asarray(_fold_second_operand(wv, w1)).astype(jnp.bfloat16)  # (8D, 64D)
        p["wz1"] = bdiag(wz1r).astype(jnp.bfloat16)
        p["wz1b2"] = jnp.asarray(_fold_second_operand(wz1r, w2)).astype(jnp.bfloat16)
        p["wz2"] = bdiag(wz2r).astype(jnp.bfloat16)

        uw1 = [nrm((2 * D, 4 * D), 1.0 / math.sqrt(2 * D)) for _ in range(T)]
        ub1 = [nrm((1, 4 * D), 0.1) for _ in range(T)]
        uw2 = [nrm((4 * D, 4 * D), 1.0 / math.sqrt(4 * D)) for _ in range(T)]
        ub2 = [nrm((1, 4 * D), 0.1) for _ in range(T)]
        p["uw1"] = jnp.concatenate(uw1, axis=1).astype(jnp.bfloat16)   # (2D, T*4D)
        p["ub1"] = jnp.concatenate(ub1, axis=1)                        # (1, T*4D) f32
        p["uw2"] = jnp.concatenate(uw2, axis=0).astype(jnp.bfloat16)   # (T*4D, 4D)
        p["ub2"] = jnp.concatenate(ub2, axis=0)                        # (T, 4D) f32 (added in f32)
        rounds.append(p)
    params["rounds"] = rounds

    # round-invariant constant selection matrices ------------------------------
    sel_mul, sel_add, sel_evx = _edge_selectors()
    esel = np.zeros((T, T * 4 * D), np.float32)
    for t in range(T):
        esel[t, t * 4 * D:(t + 1) * 4 * D] = 1.0
    asel = np.zeros((4 * D, 8 * D), np.float32)
    eyeD = np.eye(D, dtype=np.float32)
    for blk, chans in enumerate([[0], [1, 2, 3], [4, 5, 6], [7]]):
        for c in chans:
            asel[blk * D:(blk + 1) * D, c * D:(c + 1) * D] = eyeD
    params["consts"] = {
        "sel_mul": jnp.asarray(sel_mul).astype(jnp.bfloat16),
        "sel_add": jnp.asarray(sel_add).astype(jnp.bfloat16),
        "sel_evx": jnp.asarray(sel_evx).astype(jnp.bfloat16),
        "esel": jnp.asarray(esel).astype(jnp.bfloat16),
        "asel": jnp.asarray(asel).astype(jnp.bfloat16),
    }

    params["readout"] = {
        "w1": nrm((D, D // 2), 1.0 / math.sqrt(D)).astype(jnp.bfloat16),
        "b1": nrm((1, D // 2), 0.1),
        "w2": nrm((1, D // 2), 1.0 / math.sqrt(D // 2)),
        "b2": nrm((1, 1), 0.1),
    }
    return params


# ----------------------------------------------------------------------------
# Forward pass
# ----------------------------------------------------------------------------
def _round_up(x, m):
    return ((x + m - 1) // m) * m


def _pad_rows(a, rows):
    pad = rows - a.shape[0]
    if pad == 0:
        return a
    return jnp.concatenate([a, jnp.zeros((pad,) + a.shape[1:], a.dtype)], axis=0)


def forward(params, inputs):
    N = int(inputs["num_nodes"])
    G = int(inputs["num_graphs"])
    D, T, R = STATE_DIM, NUM_ATOM_TYPES, NUM_RBF
    atoms = inputs["atomic_numbers"]
    edge_list = inputs["edge_list"]
    lengths = inputs["edge_lengths"]
    edge_vectors = inputs["edge_vectors"]
    node_graph_index = inputs["node_graph_index"]
    E = edge_list.shape[0]

    n_tile = min(N_TILE_MAX, _round_up(max(N, 1), 8))
    N_pad = _round_up(N, n_tile)
    e_tile = min(E_TILE_MAX, _round_up(max(E, 1), 8))
    E_pad = _round_up(E, e_tile)

    # packed node state (N_pad, 8D): [scalar | v0 v1 v2 | b0 b1 b2 | tri]
    state = jnp.zeros((N_pad, 8 * D), jnp.float32)
    state = state.at[:N, 0:D].set(params["emb_scalar"][atoms])
    state = state.at[:N, 7 * D:8 * D].set(params["emb_tri"][atoms])

    onehot = jnp.zeros((N_pad, T), jnp.float32)
    onehot = onehot.at[:N].set((atoms[:, None] == jnp.arange(T)[None, :]).astype(jnp.float32))

    # per-edge features: [rbf*cutoff | cutoff | ev | 1] (lane-light, expanded in-kernel)
    r = lengths[:, None]
    r_c = jnp.maximum(r, 1e-6)
    freqs = (jnp.arange(1, R + 1, dtype=jnp.float32) * math.pi / R_CUT)[None, :]
    rbf = jnp.sin(r_c * freqs) / r_c
    cutoff = 0.5 * (jnp.cos(math.pi * r / R_CUT) + 1.0) * (r < R_CUT).astype(jnp.float32)
    feat = jnp.concatenate([rbf * cutoff, cutoff, edge_vectors, jnp.ones_like(r)], axis=1)
    feat = _pad_rows(feat, E_pad)                        # (E_pad, 25); padded rows -> zero msgs

    senders = _pad_rows(edge_list[:, 0], E_pad)          # padded edges point at node 0
    receivers = _pad_rows(edge_list[:, 1], E_pad)        # and carry exactly-zero messages

    consts = params["consts"]
    ro = params["readout"]
    atomwise = None
    for r_i, p in enumerate(params["rounds"]):
        # TODO(synk): move the sender gather / receiver scatter in-kernel (scalar-prefetched
        # indices + row DMAs, or receiver-sorted segment sum) to remove the remaining
        # per-round HBM round trip through XLA gather/scatter.
        send = state.astype(jnp.bfloat16)[senders]                    # (E_pad, 8D) bf16
        msg = edge_messages(p, consts, feat, send, e_tile)            # (E_pad, 8D) bf16
        state = state.at[receivers].add(msg.astype(jnp.float32))      # f32 accumulation
        if r_i == NUM_ROUNDS - 1:
            state, atomwise = node_update(p, consts, ro, state, onehot, n_tile, True)
        else:
            state = node_update(p, consts, ro, state, onehot, n_tile, False)

    atomwise = atomwise[:N]                                           # (N, 1)
    output = jnp.zeros((G, 1), jnp.float32).at[node_graph_index].add(atomwise)
    return output


# ----------------------------------------------------------------------------
if __name__ == "__main__":
    key = jax.random.PRNGKey(0)
    pkey, akey, lkey, vkey = jax.random.split(key, 4)
    params = init_params(pkey)

    nodes_per_graph = 6
    num_graphs = 2
    N = nodes_per_graph * num_graphs
    edges = []
    for g in range(num_graphs):
        base = g * nodes_per_graph
        for a in range(nodes_per_graph):
            for b in range(nodes_per_graph):
                if a != b:
                    edges.append((base + a, base + b))
    edge_list = jnp.array(edges, dtype=jnp.int32)                  # (60, 2)
    E = edge_list.shape[0]

    atomic_numbers = jax.random.randint(akey, (N,), 0, NUM_ATOM_TYPES, dtype=jnp.int32)
    edge_lengths = jax.random.uniform(lkey, (E,), jnp.float32, 0.5, 4.5)
    edge_vectors = jax.random.normal(vkey, (E, 3), jnp.float32)
    node_graph_index = jnp.repeat(jnp.arange(num_graphs, dtype=jnp.int32), nodes_per_graph)

    inputs = dict(
        num_nodes=N,
        num_graphs=num_graphs,
        atomic_numbers=atomic_numbers,
        edge_list=edge_list,
        edge_lengths=edge_lengths,
        edge_vectors=edge_vectors,
        node_graph_index=node_graph_index,
    )

    out = forward(params, inputs)
    out = jax.block_until_ready(out)
    assert out.shape == (num_graphs, 1) and out.dtype == jnp.float32
    assert bool(jnp.all(jnp.isfinite(out)))
    print("KERNEL_OK")
</pallas_src>

<mosaic_0001>
module attributes {stable_mosaic.version = 11 : i64} {
  func.func @edge_kernel(%arg0: i32, %arg1: memref<64x25xf32, #tpu.memory_space<vmem>>, %arg2: memref<64x256xbf16, #tpu.memory_space<vmem>>, %arg3: memref<25x160xbf16, #tpu.memory_space<vmem>>, %arg4: memref<32x160xbf16, #tpu.memory_space<vmem>>, %arg5: memref<1x160xf32, #tpu.memory_space<vmem>>, %arg6: memref<160x160xbf16, #tpu.memory_space<vmem>>, %arg7: memref<1x160xf32, #tpu.memory_space<vmem>>, %arg8: memref<160x256xbf16, #tpu.memory_space<vmem>>, %arg9: memref<160x256xbf16, #tpu.memory_space<vmem>>, %arg10: memref<25x256xbf16, #tpu.memory_space<vmem>>, %arg11: memref<64x256xbf16, #tpu.memory_space<vmem>>) attributes {dimension_semantics = [#tpu.dimension_semantics<parallel>], iteration_bounds = array<i64: 1>, scalar_prefetch = 0 : i64, scratch_operands = 0 : i64, tpu.core_type = #tpu.core_type<tc>, window_params = [{transform_indices = @transform_0, window_bounds = array<i64: 64, 25>}, {transform_indices = @transform_1, window_bounds = array<i64: 64, 256>}, {pipeline_mode = #tpu.pipeline_mode<synchronous>, transform_indices = @transform_2, window_bounds = array<i64: 25, 160>}, {pipeline_mode = #tpu.pipeline_mode<synchronous>, transform_indices = @transform_3, window_bounds = array<i64: 32, 160>}, {pipeline_mode = #tpu.pipeline_mode<synchronous>, transform_indices = @transform_4, window_bounds = array<i64: 1, 160>}, {pipeline_mode = #tpu.pipeline_mode<synchronous>, transform_indices = @transform_5, window_bounds = array<i64: 160, 160>}, {pipeline_mode = #tpu.pipeline_mode<synchronous>, transform_indices = @transform_6, window_bounds = array<i64: 1, 160>}, {pipeline_mode = #tpu.pipeline_mode<synchronous>, transform_indices = @transform_7, window_bounds = array<i64: 160, 256>}, {pipeline_mode = #tpu.pipeline_mode<synchronous>, transform_indices = @transform_8, window_bounds = array<i64: 160, 256>}, {pipeline_mode = #tpu.pipeline_mode<synchronous>, transform_indices = @transform_9, window_bounds = array<i64: 25, 256>}, {transform_indices = @transform_10, window_bounds = array<i64: 64, 256>}]} {
    %c0 = arith.constant 0 : index
    %c0_0 = arith.constant 0 : index
    %0 = vector.load %arg1[%c0, %c0_0] : memref<64x25xf32, #tpu.memory_space<vmem>>, vector<64x25xf32>
    %c0_1 = arith.constant 0 : index
    %c0_2 = arith.constant 0 : index
    %1 = vector.load %arg2[%c0_1, %c0_2] : memref<64x256xbf16, #tpu.memory_space<vmem>>, vector<64x256xbf16>
    %2 = arith.extf %1 : vector<64x256xbf16> to vector<64x256xf32>
    %3 = vector.extract_strided_slice %2 {offsets = [0, 0], sizes = [64, 32], strides = [1, 1]} : vector<64x256xf32> to vector<64x32xf32>
    %c0_3 = arith.constant 0 : index
    %c0_4 = arith.constant 0 : index
    %4 = vector.load %arg4[%c0_3, %c0_4] : memref<32x160xbf16, #tpu.memory_space<vmem>>, vector<32x160xbf16>
    %5 = arith.truncf %3 : vector<64x32xf32> to vector<64x32xbf16>
    %cst = arith.constant dense<0.000000e+00> : vector<64x160xf32>
    %6 = tpu.matmul %5, %4, %cst {dimension_numbers = #tpu.dot_dimension_numbers<[1], [0], [0], [1], [0, 0, 1, 1], [], []>} : vector<64x32xbf16>, vector<32x160xbf16>, vector<64x160xf32> -> vector<64x160xf32>
    %c0_5 = arith.constant 0 : index
    %c0_6 = arith.constant 0 : index
    %7 = vector.load %arg5[%c0_5, %c0_6] : memref<1x160xf32, #tpu.memory_space<vmem>>, vector<1x160xf32>
    %8 = vector.broadcast %7 : vector<1x160xf32> to vector<64x160xf32>
    %9 = arith.addf %6, %8 : vector<64x160xf32>
    %10 = arith.negf %9 : vector<64x160xf32>
    %11 = math.exp %10 : vector<64x160xf32>
    %cst_7 = arith.constant 1.000000e+00 : f32
    %12 = vector.broadcast %cst_7 : f32 to vector<64x160xf32>
    %13 = arith.addf %12, %11 : vector<64x160xf32>
    %14 = arith.divf %12, %13 : vector<64x160xf32>
    %15 = arith.mulf %9, %14 : vector<64x160xf32>
    %c0_8 = arith.constant 0 : index
    %c0_9 = arith.constant 0 : index
    %16 = vector.load %arg6[%c0_8, %c0_9] : memref<160x160xbf16, #tpu.memory_space<vmem>>, vector<160x160xbf16>
    %17 = arith.truncf %15 : vector<64x160xf32> to vector<64x160xbf16>
    %cst_10 = arith.constant dense<0.000000e+00> : vector<64x160xf32>
    %18 = tpu.matmul %17, %16, %cst_10 {dimension_numbers = #tpu.dot_dimension_numbers<[1], [0], [0], [1], [0, 0, 1, 1], [], []>} : vector<64x160xbf16>, vector<160x160xbf16>, vector<64x160xf32> -> vector<64x160xf32>
    %c0_11 = arith.constant 0 : index
    %c0_12 = arith.constant 0 : index
    %19 = vector.load %arg7[%c0_11, %c0_12] : memref<1x160xf32, #tpu.memory_space<vmem>>, vector<1x160xf32>
    %20 = vector.broadcast %19 : vector<1x160xf32> to vector<64x160xf32>
    %21 = arith.addf %18, %20 : vector<64x160xf32>
    %c0_13 = arith.constant 0 : index
    %c0_14 = arith.constant 0 : index
    %22 = vector.load %arg3[%c0_13, %c0_14] : memref<25x160xbf16, #tpu.memory_space<vmem>>, vector<25x160xbf16>
    %23 = arith.truncf %0 : vector<64x25xf32> to vector<64x25xbf16>
    %cst_15 = arith.constant dense<0.000000e+00> : vector<64x160xf32>
    %24 = tpu.matmul %23, %22, %cst_15 {dimension_numbers = #tpu.dot_dimension_numbers<[1], [0], [0], [1], [0, 0, 1, 1], [], []>} : vector<64x25xbf16>, vector<25x160xbf16>, vector<64x160xf32> -> vector<64x160xf32>
    %25 = arith.mulf %21, %24 : vector<64x160xf32>
    %c0_16 = arith.constant 0 : index
    %c0_17 = arith.constant 0 : index
    %26 = vector.load %arg8[%c0_16, %c0_17] : memref<160x256xbf16, #tpu.memory_space<vmem>>, vector<160x256xbf16>
    %27 = arith.truncf %25 : vector<64x160xf32> to vector<64x160xbf16>
    %cst_18 = arith.constant dense<0.000000e+00> : vector<64x256xf32>
    %28 = tpu.matmul %27, %26, %cst_18 {dimension_numbers = #tpu.dot_dimension_numbers<[1], [0], [0], [1], [0, 0, 1, 1], [], []>} : vector<64x160xbf16>, vector<160x256xbf16>, vector<64x256xf32> -> vector<64x256xf32>
    %c0_19 = arith.constant 0 : index
    %c0_20 = arith.constant 0 : index
    %29 = vector.load %arg9[%c0_19, %c0_20] : memref<160x256xbf16, #tpu.memory_space<vmem>>, vector<160x256xbf16>
    %30 = arith.truncf %25 : vector<64x160xf32> to vector<64x160xbf16>
    %cst_21 = arith.constant dense<0.000000e+00> : vector<64x256xf32>
    %31 = tpu.matmul %30, %29, %cst_21 {dimension_numbers = #tpu.dot_dimension_numbers<[1], [0], [0], [1], [0, 0, 1, 1], [], []>} : vector<64x160xbf16>, vector<160x256xbf16>, vector<64x256xf32> -> vector<64x256xf32>
    %c0_22 = arith.constant 0 : index
    %c0_23 = arith.constant 0 : index
    %32 = vector.load %arg10[%c0_22, %c0_23] : memref<25x256xbf16, #tpu.memory_space<vmem>>, vector<25x256xbf16>
    %33 = arith.truncf %0 : vector<64x25xf32> to vector<64x25xbf16>
    %cst_24 = arith.constant dense<0.000000e+00> : vector<64x256xf32>
    %34 = tpu.matmul %33, %32, %cst_24 {dimension_numbers = #tpu.dot_dimension_numbers<[1], [0], [0], [1], [0, 0, 1, 1], [], []>} : vector<64x25xbf16>, vector<25x256xbf16>, vector<64x256xf32> -> vector<64x256xf32>
    %35 = arith.mulf %28, %2 : vector<64x256xf32>
    %36 = arith.mulf %31, %34 : vector<64x256xf32>
    %37 = arith.addf %35, %36 : vector<64x256xf32>
    %38 = arith.truncf %37 : vector<64x256xf32> to vector<64x256xbf16>
    %c0_25 = arith.constant 0 : index
    %c0_26 = arith.constant 0 : index
    %39 = vector.load %arg11[%c0_25, %c0_26] : memref<64x256xbf16, #tpu.memory_space<vmem>>, vector<64x256xbf16>
    tpu.vector_store %arg11[%c0_25, %c0_26], %38 {strides = array<i32>} : memref<64x256xbf16, #tpu.memory_space<vmem>>, vector<64x256xbf16>,
    return
  }
  func.func @transform_0(%arg0: i32) -> (i32, i32) {
    %c0_i32 = arith.constant 0 : i32
    %c0_i32_0 = arith.constant 0 : i32
    return %arg0, %c0_i32 : i32, i32
  }
  func.func @transform_1(%arg0: i32) -> (i32, i32) {
    %c0_i32 = arith.constant 0 : i32
    %c0_i32_0 = arith.constant 0 : i32
    return %arg0, %c0_i32 : i32, i32
  }
  func.func @transform_2(%arg0: i32) -> (i32, i32) {
    %c0_i32 = arith.constant 0 : i32
    %c0_i32_0 = arith.constant 0 : i32
    %c0_i32_1 = arith.constant 0 : i32
    return %c0_i32, %c0_i32_0 : i32, i32
  }
  func.func @transform_3(%arg0: i32) -> (i32, i32) {
    %c0_i32 = arith.constant 0 : i32
    %c0_i32_0 = arith.constant 0 : i32
    %c0_i32_1 = arith.constant 0 : i32
    return %c0_i32, %c0_i32_0 : i32, i32
  }
  func.func @transform_4(%arg0: i32) -> (i32, i32) {
    %c0_i32 = arith.constant 0 : i32
    %c0_i32_0 = arith.constant 0 : i32
    %c0_i32_1 = arith.constant 0 : i32
    return %c0_i32, %c0_i32_0 : i32, i32
  }
  func.func @transform_5(%arg0: i32) -> (i32, i32) {
    %c0_i32 = arith.constant 0 : i32
    %c0_i32_0 = arith.constant 0 : i32
    %c0_i32_1 = arith.constant 0 : i32
    return %c0_i32, %c0_i32_0 : i32, i32
  }
  func.func @transform_6(%arg0: i32) -> (i32, i32) {
    %c0_i32 = arith.constant 0 : i32
    %c0_i32_0 = arith.constant 0 : i32
    %c0_i32_1 = arith.constant 0 : i32
    return %c0_i32, %c0_i32_0 : i32, i32
  }
  func.func @transform_7(%arg0: i32) -> (i32, i32) {
    %c0_i32 = arith.constant 0 : i32
    %c0_i32_0 = arith.constant 0 : i32
    %c0_i32_1 = arith.constant 0 : i32
    return %c0_i32, %c0_i32_0 : i32, i32
  }
  func.func @transform_8(%arg0: i32) -> (i32, i32) {
    %c0_i32 = arith.constant 0 : i32
    %c0_i32_0 = arith.constant 0 : i32
    %c0_i32_1 = arith.constant 0 : i32
    return %c0_i32, %c0_i32_0 : i32, i32
  }
  func.func @transform_9(%arg0: i32) -> (i32, i32) {
    %c0_i32 = arith.constant 0 : i32
    %c0_i32_0 = arith.constant 0 : i32
    %c0_i32_1 = arith.constant 0 : i32
    return %c0_i32, %c0_i32_0 : i32, i32
  }
  func.func @transform_10(%arg0: i32) -> (i32, i32) {
    %c0_i32 = arith.constant 0 : i32
    %c0_i32_0 = arith.constant 0 : i32
    return %arg0, %c0_i32 : i32, i32
  }
}

</mosaic_0001>

<bundles_post_ra>
// kernel: tpu_custom_call.1
= control target key start
LH: loop header
LB: loop body
LE: loop exit
PB: predicated region body
PF: predicated region fallthrough
CT: control target
= control target key end

     0   :  { %15 = vsyncpa [#allocation3], 0  ;;  %s3238_s0 = inlined_call_operand.vmem [shape: f32[64,25], index: 0, kind: input, shape index: {}]   ;;  %s3239_s1 = inlined_call_operand.vmem [shape: bf16[64,256], index: 1, kind: input, shape index: {}]   ;;  %s3240_s2 = inlined_call_operand.vmem [shape: bf16[25,160], index: 2, kind: input, shape index: {}]   ;;  %s3241_s3 = inlined_call_operand.hbm [shape: bf16[32,160], index: 3, kind: input, shape index: {}]   ;;  %s3242_s4 = inlined_call_operand.vmem [shape: f32[1,160], index: 4, kind: input, shape index: {}]   ;;  %s3243_s5 = inlined_call_operand.hbm [shape: bf16[160,160], index: 5, kind: input, shape index: {}]   ;;  %s3244_s6 = inlined_call_operand.vmem [shape: f32[1,160], index: 6, kind: input, shape index: {}]   ;;  %s3245_s7 = inlined_call_operand.hbm [shape: bf16[160,256], index: 7, kind: input, shape index: {}]   ;;  %s3246_s8 = inlined_call_operand.hbm [shape: bf16[160,256], index: 8, kind: input, shape index: {}]   ;;  %s3247_s9 = inlined_call_operand.hbm [shape: bf16[25,256], index: 9, kind: input, shape index: {}]   ;;  %s3248_s10 = inlined_call_operand.hbm [shape: bf16[64,256], index: 10, kind: output, shape index: {}]  }
   0x1   :  { %16 = vsyncpa [#allocation6], 0 }
   0x2   :  { %17 = vsyncpa [#allocation9], 0 }
   0x3   :  { %18 = vsyncpa [#allocation4], 0  ;;  %s44_s15 = sshll.u32 %s3243_s5, 4  ;;  %s2281_s16 = smov [#allocation5]   ;;  %s45_s15 = int_to_ptr.hbm [resolvable:$true] %s44_s15 }
   0x4   :  { %s46_s17 = sshll.u32 %s2281_s16, 4  ;;  %s72_s20 = sshll.u32 %s3246_s8, 4  ;;  %s47_s17 = int_to_ptr.vmem [resolvable:$true] %s46_s17  ;;  %s73_s20 = int_to_ptr.hbm [resolvable:$true] %s72_s20 }
   0x5   :  { %s2282_s21 = smov 128   ;;  %s2283_s22 = smov 8  }
   0x6   :  { %52 = dma.hbm_to_vmem [thread:$0]  %s45_s15, 2560, %s47_s17, [#allocation6], %s2282_s21, %s2282_s21, %s2283_s22  }
   0x7   :  { %s2284_s23 = smov [#allocation8]   ;;  %s29_s5 = sshll.u32 %s3241_s3, 4  ;;  %s30_s5 = int_to_ptr.hbm [resolvable:$true] %s29_s5 }
   0x8   :  { %s74_s24 = sshll.u32 %s2284_s23, 4  ;;  %s59_s28 = sshll.u32 %s3245_s7, 4  ;;  %s75_s24 = int_to_ptr.vmem [resolvable:$true] %s74_s24  ;;  %s60_s28 = int_to_ptr.hbm [resolvable:$true] %s59_s28 }
   0x9   :  { %80 = dma.hbm_to_vmem [thread:$0]  %s73_s20, 2560, %s75_s24, [#allocation9], %s2282_s21, %s2282_s21, %s2283_s22  }
   0xa   :  { %s2285_s29 = smov [#allocation2]   ;;  %s2286_s11 = smov [#allocation7]  }
   0xb   :  { %s31_s30 = sshll.u32 %s2285_s29, 4  ;;  %s61_s3 = sshll.u32 %s2286_s11, 4  ;;  %s32_s30 = int_to_ptr.vmem [resolvable:$true] %s31_s30  ;;  %s62_s3 = int_to_ptr.vmem [resolvable:$true] %s61_s3 }
   0xc   :  { %37 = dma.hbm_to_vmem [thread:$0]  %s30_s5, 512, %s32_s30, [#allocation3], %s2282_s21, %s2282_s21, %s2283_s22  }
   0xd   :  { %s85_s14 = sshll.u32 %s3247_s9, 4  ;;  %s2287_s7 = smov [#allocation10]   ;;  %s86_s14 = int_to_ptr.hbm [resolvable:$true] %s85_s14 }
   0xe   :  { %67 = dma.hbm_to_vmem [thread:$0]  %s60_s28, 2560, %s62_s3, [#allocation6], %s2282_s21, %s2282_s21, %s2283_s22  }
   0xf   :  { %s87_s15 = sshll.u32 %s2287_s7, 4  ;;  %s88_s15 = int_to_ptr.vmem [resolvable:$true] %s87_s15 }
  0x10   :  { %93 = dma.hbm_to_vmem [thread:$0]  %s86_s14, 512, %s88_s15, [#allocation9], %s2282_s21, %s2282_s21, %s2283_s22  }
  0x11   :  { %2273 = dma.done.wait [#allocation3], 512  }
  0x12   :  { %2274 = vsyncadd [#allocation3], 4294966784 }
  0x13   :  { %2275 = dma.done.wait [#allocation6], 5120  }
  0x14   :  { %2276 = vsyncadd [#allocation6], 4294962176 }
  0x15   :  { %2277 = dma.done.wait [#allocation9], 3072  }
  0x16   :  { %2278 = vsyncadd [#allocation9], 4294964224  ;;  %v1630_v0 = vld [vmem:[#allocation2 + $0x10] sm:$0xf]  ;;  %v1975_v1 = vld [vmem:[#allocation2 + $0x14] sm:$0xf0] }
  0x17   :  { %v1974_v2 = vld [vmem:[#allocation2 + $0x14] sm:$0xf]  ;;  %v1631_v3 = vor.u32 %v1975_v1, %v1630_v0  ;;  %v1632_v4 = vld [vmem:[#allocation2 + $0x18] sm:$0xf0]  ;;  %v1622_v5 = vld [vmem:[#allocation2] sm:$0xf] }
  0x18   :  { %v1973_v6 = vld [vmem:[#allocation2 + $0x4] sm:$0xf0]  ;;  %v1635_v7 = vor.u32 %v1974_v2, %v1632_v4  ;;  %v1972_v8 = vld [vmem:[#allocation2 + $0x4] sm:$0xf]  ;;  %v1624_v9 = vld [vmem:[#allocation2 + $0x8] sm:$0xf0] }
  0x19   :  { %v2378_v10 = vld [vmem:[%s3239_s1] sm:$0xff]  ;;  %200 = vmatpush.bf16.msra.mxu0 %v1631_v3  ;;  %2044 = vmatpush.bf16.msra.mxu3 %v1631_v3  ;;  %v1623_v11 = vor.u32 %v1973_v6, %v1622_v5  ;;  %v2383_v12 = vld [vmem:[%s3239_s1 + $0x8] sm:$0xff]  ;;  %v1627_v16 = vor.u32 %v1972_v8, %v1624_v9  ;;  %vm181_vm0 = vcmask 261120   ;;  %v2414_v22 = vld [vmem:[%s3239_s1 + $0x10] sm:$0xff]  ;;  %s2289_s11 = smov [#allocation11]  }
  0x1a   :  { %v3256_v13 = vunpack.c.l.bf16 %v2378_v10  ;;  %v2389_v14 = vld [vmem:[%s3239_s1 + $0x20] sm:$0xff]  ;;  %v2394_v15 = vld [vmem:[%s3239_s1 + $0x28] sm:$0xff]  ;;  %229 = vmatpush.bf16.msra.mxu1 %v1635_v7  ;;  %2046 = vmatpush.bf16.msra.mxu2 %v1635_v7  ;;  %v3255_v17 = vunpack.c.l.bf16 %v2383_v12  ;;  %v2419_v23 = vld [vmem:[%s3239_s1 + $0x18] sm:$0xff]  ;;  %v3254_v26 = vunpack.c.l.bf16 %v2414_v22  ;;  %s1603_s3 = sshll.u32 %s2289_s11, 4  ;;  %s1604_s3 = int_to_ptr.vmem [resolvable:$true] %s1603_s3 }
  0x1b   :  { %3262 = vst [vmem:[#allocation16_spill] sm:$0xff] %v2389_v14  ;;  %v3252_v18 = vunpack.c.l.bf16 %v2389_v14  ;;  %v3251_v19 = vunpack.c.l.bf16 %v2394_v15  ;;  %v2424_v24 = vld [vmem:[%s3239_s1 + $0x30] sm:$0xff]  ;;  %v2429_v25 = vld [vmem:[%s3239_s1 + $0x38] sm:$0xff]  ;;  %v3253_v27 = vunpack.c.l.bf16 %v2419_v23  ;;  %v155_v38 = vld [vmem:[%s3242_s4] sm:$0x3] }
  0x1c   :  { %3263 = vst [vmem:[#allocation17_spill] sm:$0xff] %v2394_v15  ;;  %v151_v20 = vpack.c.bf16 %v3255_v17, %v3256_v13  ;;  %v3250_v28 = vunpack.c.l.bf16 %v2424_v24  ;;  %v3249_v29 = vunpack.c.l.bf16 %v2429_v25  ;;  %v1718_v32 = vld [vmem:[#allocation5 + $0x70] sm:$0xf]  ;;  %v1991_v33 = vld [vmem:[#allocation5 + $0x74] sm:$0xf0]  ;;  %v2450_v39 = vperm.slane %v155_v38, 1 }
  0x1d   :  { %v153_v21 = vpack.c.bf16 %v3251_v19, %v3252_v18  ;;  %201 = vmatpush.bf16.msra.mxu0 %v1623_v11  ;;  %2045 = vmatpush.bf16.msra.mxu3 %v1623_v11  ;;  %3264 = vst [vmem:[#allocation18_spill] sm:$0xff] %v2419_v23  ;;  %v152_v30 = vpack.c.bf16 %v3253_v27, %v3254_v26  ;;  %v1990_v34 = vld [vmem:[#allocation5 + $0x74] sm:$0xf]  ;;  %v1720_v36 = vld [vmem:[#allocation5 + $0x78] sm:$0xf0]  ;;  %v2456_v50 = vperm.slane %v155_v38, 0 }
  0x1e   :  { %230 = vmatpush.bf16.msra.mxu1 %v1627_v16  ;;  %2047 = vmatpush.bf16.msra.mxu2 %v1627_v16  ;;  %3265 = vst [vmem:[#allocation19_spill] sm:$0xff] %v2424_v24  ;;  %v154_v31 = vpack.c.bf16 %v3249_v29, %v3250_v28  ;;  %v1719_v35 = vor.u32 %v1991_v33, %v1718_v32  ;;  %v1710_v40 = vld [vmem:[#allocation5 + $0x60] sm:$0xf]  ;;  %v1989_v41 = vld [vmem:[#allocation5 + $0x64] sm:$0xf0] }
  0x1f   :  { %3266 = vst [vmem:[#allocation20_spill] sm:$0xff] %v2429_v25  ;;  %v1723_v37 = vor.u32 %v1990_v34, %v1720_v36  ;;  %v1711_v43 = vor.u32 %v1989_v41, %v1710_v40  ;;  %v1988_v46 = vld [vmem:[#allocation5 + $0x64] sm:$0xf]  ;;  %v1712_v47 = vld [vmem:[#allocation5 + $0x68] sm:$0xf0] }
  0x20   :  { %1636 = vmatmul.msk.bf16.vlgmr.msra.gmra.mxu0 %vm181_vm0, %v151_v20  ;;  %1638 = vmatmul.msk.bf16.vlgmr.msra.gmra.mxu3 %vm181_vm0, %v153_v21  ;;  %v1715_v48 = vor.u32 %v1988_v46, %v1712_v47  ;;  %v1702_v51 = vld [vmem:[#allocation5 + $0x50] sm:$0xf]  ;;  %v1987_v52 = vld [vmem:[#allocation5 + $0x54] sm:$0xf0]  ;;  %v1986_v53 = vld [vmem:[#allocation5 + $0x54] sm:$0xf] }
  0x21   :  { %1640 = vmatmul.msk.bf16.vlgmr.msra.gmra.mxu1 %vm181_vm0, %v151_v20  ;;  %1642 = vmatmul.msk.bf16.vlgmr.msra.gmra.mxu2 %vm181_vm0, %v153_v21  ;;  %v1703_v54 = vor.u32 %v1987_v52, %v1702_v51  ;;  %v1704_v55 = vld [vmem:[#allocation5 + $0x58] sm:$0xf0]  ;;  %v1734_v62 = vld [vmem:[#allocation5 + $0x90] sm:$0xf]  ;;  %v1995_v63 = vld [vmem:[#allocation5 + $0x94] sm:$0xf0] }
  0x22   :  { %718 = vmatpush.bf16.msrb.mxu2 %v1719_v35  ;;  %776 = vmatpush.bf16.msrb.mxu0 %v1723_v37  ;;  %v1707_v57 = vor.u32 %v1986_v53, %v1704_v55  ;;  %v1735_v0 = vor.u32 %v1995_v63, %v1734_v62  ;;  %v1694_v1 = vld [vmem:[#allocation5 + $0x40] sm:$0xf]  ;;  %v1985_v2 = vld [vmem:[#allocation5 + $0x44] sm:$0xf0]  ;;  %v1984_v9 = vld [vmem:[#allocation5 + $0x44] sm:$0xf] }
  0x23   :  { %v1695_v5 = vor.u32 %v1985_v2, %v1694_v1  ;;  %v1696_v11 = vld [vmem:[#allocation5 + $0x48] sm:$0xf0]  ;;  %v1686_v16 = vld [vmem:[#allocation5 + $0x30] sm:$0xf]  ;;  %v1983_v20 = vld [vmem:[#allocation5 + $0x34] sm:$0xf0] }
  0x24   :  { %753 = vmatpush.bf16.msrb.mxu3 %v1735_v0  ;;  %v1699_v21 = vor.u32 %v1984_v9, %v1696_v11  ;;  %v1977_v27 = vld [vmem:[#allocation5 + $0x4] sm:$0xf0]  ;;  %v1976_v26 = vld [vmem:[#allocation5 + $0x4] sm:$0xf]  ;;  %v1664_v17 = vld [vmem:[#allocation5 + $0x8] sm:$0xf0] }
  0x25   :  { %v1667_v25 = vor.u32 %v1976_v26, %v1664_v17  ;;  %v1998_v24 = vld [vmem:[%s3240_s2 + $0x14] sm:$0xf] }
  0x26   :  { %719 = vmatpush.bf16.msrb.mxu2 %v1711_v43  ;;  %777 = vmatpush.bf16.msrb.mxu0 %v1715_v48 }
  0x2a   :  { %720 = vmatpush.bf16.msrb.mxu2 %v1703_v54  ;;  %778 = vmatpush.bf16.msrb.mxu0 %v1707_v57 }
  0x2e   :  { %721 = vmatpush.bf16.msrb.mxu2 %v1695_v5  ;;  %779 = vmatpush.bf16.msrb.mxu0 %v1699_v21  ;;  %v1726_v21 = vld [vmem:[#allocation5 + $0x80] sm:$0xf] }
  0x30   :  { %1637 = vmatmul.msk.bf16.gmra.mxu0 %vm181_vm0, %v152_v30  ;;  %1639 = vmatmul.msk.bf16.gmra.mxu3 %vm181_vm0, %v154_v31 }
  0x31   :  { %1641 = vmatmul.msk.bf16.gmra.mxu1 %vm181_vm0, %v152_v30  ;;  %1643 = vmatmul.msk.bf16.gmra.mxu2 %vm181_vm0, %v154_v31  ;;  %v1687_v31 = vor.u32 %v1983_v20, %v1686_v16 }
  0x33   :  { %722 = vmatpush.bf16.msrb.mxu2 %v1687_v31 }
  0x9d   :  { %v203_v42 = vpop.f32.mrf.mxu0 }
  0x9e   :  { %v232_v44 = vpop.f32.mrf.mxu1  ;;  %v2459_v58 = vadd.f32 %v203_v42, %v2456_v50 }
  0x9f   :  { %v2453_v45 = vadd.f32 %v232_v44, %v2450_v39 }
  0xa0   :  { %v1644_v6 = vmul.f32 -1.442695, %v2459_v58 }
  0xa1   :  { %v1645_v49 = vmul.f32 -1.442695, %v2453_v45 }
  0xa3   :  { %2057 = vpow2.f32 %v1645_v49  ;;  %v213_v37 = vpop.f32.mrf.mxu3 }
  0xa4   :  { %v242_v30 = vpop.f32.mrf.mxu2  ;;  %v2488_v47 = vadd.f32 %v213_v37, %v2456_v50 }
  0xa5   :  { %v205_v56 = vpop.f32.mrf.mxu0  ;;  %v2478_v38 = vadd.f32 %v242_v30, %v2450_v39  ;;  %v1993_v30 = vld [vmem:[#allocation5 + $0x84] sm:$0xf0] }
  0xa6   :  { %v234_v59 = vpop.f32.mrf.mxu1  ;;  %v2462_v60 = vadd.f32 %v205_v56, %v2456_v50  ;;  %v1652_v54 = vmul.f32 -1.442695, %v2488_v47 }
  0xa7   :  { %v2465_v61 = vadd.f32 %v234_v59, %v2450_v39  ;;  %v1653_v48 = vmul.f32 -1.442695, %v2478_v38 }
  0xa8   :  { %v1646_v8 = vmul.f32 -1.442695, %v2462_v60 }
  0xa9   :  { %v2058_v3 = vpop.eup %2057  ;;  %v1647_v4 = vmul.f32 -1.442695, %v2465_v61 }
  0xaa   :  { %v2469_v7 = vadd.f32 1.0, %v2058_v3 }
  0xab   :  { %v215_v63 = vpop.f32.mrf.mxu3 }
  0xac   :  { %2059 = vrcp.f32 %v2469_v7  ;;  %v244_v51 = vpop.f32.mrf.mxu2  ;;  %v340_v59 = vand.u32 2147483647, %v2469_v7  ;;  %vm336_vm2 = vweird.f32 %v2469_v7  ;;  %v342_v1 = vand.u32 2147483648, %v2469_v7 }
  0xad   :  { %2061 = vpow2.f32 %v1647_v4  ;;  %v208_v46 = vpop.f32.mrf.mxu0  ;;  %v2502_v55 = vadd.f32 %v244_v51, %v2450_v39  ;;  %v2530_v20 = vadd.f32 %v215_v63, %v2456_v50  ;;  %v1678_v51 = vld [vmem:[#allocation5 + $0x20] sm:$0xf] }
  0xae   :  { %2063 = vpow2.f32 %v1644_v6  ;;  %v237_v43 = vpop.f32.mrf.mxu1  ;;  %v2494_v52 = vadd.f32 %v208_v46, %v2456_v50  ;;  %vm2524_vm4 = vcmp.eq.f32.partialorder %v340_v59, 8.507059e+37 }
  0xaf   :  { %2065 = vpow2.f32 %v1646_v8  ;;  %v2498_v53 = vadd.f32 %v237_v43, %v2450_v39  ;;  %v1655_v6 = vmul.f32 -1.442695, %v2502_v55  ;;  %v1688_v43 = vld [vmem:[#allocation5 + $0x38] sm:$0xf0] }
  0xb0   :  { %v1648_v0 = vmul.f32 -1.442695, %v2494_v52 }
  0xb1   :  { %v1649_v2 = vmul.f32 -1.442695, %v2498_v53 }
  0xb2   :  { %v2473_v32 = vpop.eup %2059 }
  0xb3   :  { %v2062_v33 = vpop.eup %2061  ;;  %v332_v34 = vmul.f32 %v2473_v32, %v2469_v7  ;;  %vm337_vm1 = vweird.f32 %v2473_v32  ;;  %v1979_v7 = vld [vmem:[#allocation5 + $0x14] sm:$0xf0] }
  0xb4   :  { %v2064_v35 = vpop.eup %2063  ;;  %v2480_v40 = vadd.f32 1.0, %v2062_v33  ;;  %vm2514_vm3 = vmor %vm336_vm2, %vm337_vm1 }
  0xb5   :  { %v2066_v36 = vpop.eup %2065  ;;  %v333_v41 = vsub.f32 1.0, %v332_v34  ;;  %v2482_v42 = vadd.f32 1.0, %v2064_v35  ;;  %v210_v35 = vpop.f32.mrf.mxu0 }
  0xb6   :  { %v2484_v44 = vadd.f32 1.0, %v2066_v36  ;;  %2067 = vrcp.f32 %v2480_v40  ;;  %v239_v8 = vpop.f32.mrf.mxu1  ;;  %v372_v16 = vand.u32 2147483648, %v2480_v40  ;;  %v370_v34 = vand.u32 2147483647, %v2480_v40 }
  0xb7   :  { %v334_v49 = vmul.f32 %v2473_v32, %v333_v41  ;;  %2069 = vrcp.f32 %v2482_v42  ;;  %v343_v36 = vor.u32 1.1754944e-38, %v342_v1  ;;  %v2536_v37 = vadd.f32 %v239_v8, %v2450_v39  ;;  %v1982_v41 = vld [vmem:[#allocation5 + $0x34] sm:$0xf]  ;;  %v1680_v1 = vld [vmem:[#allocation5 + $0x28] sm:$0xf0] }
  0xb8   :  { %2071 = vrcp.f32 %v2484_v44  ;;  %vm366_vm6 = vweird.f32 %v2480_v40  ;;  %v2547_v63 = vadd.f32 %v210_v35, %v2456_v50  ;;  %vm371_vm8 = vcmp.eq.f32.partialorder %v370_v34, 8.507059e+37  ;;  %v1670_v8 = vld [vmem:[#allocation5 + $0x10] sm:$0xf]  ;;  %v218_v34 = vpop.f32.mrf.mxu3 }
  0xb9   :  { %2073 = vpow2.f32 %v1653_v48  ;;  %v335_v57 = vadd.f32 %v2473_v32, %v334_v49  ;;  %v1727_v49 = vor.u32 %v1993_v30, %v1726_v21  ;;  %v1654_v21 = vmul.f32 -1.442695, %v2530_v20 }
  0xba   :  { %2075 = vpow2.f32 %v1652_v54  ;;  %v1981_v54 = vld [vmem:[#allocation5 + $0x24] sm:$0xf0]  ;;  %v1651_v30 = vmul.f32 -1.442695, %v2536_v37  ;;  %vm321_vm11 = vweird.f32 %v2482_v42  ;;  %vm351_vm13 = vweird.f32 %v2484_v44 }
  0xbb   :  { %v339_v11 = vsel %vm2514_vm3, %v2473_v32, %v335_v57  ;;  %2077 = vpow2.f32 %v1648_v0  ;;  %v1980_v0 = vld [vmem:[#allocation5 + $0x24] sm:$0xf]  ;;  %754 = vmatpush.bf16.msrb.mxu3 %v1727_v49 }
  0xbc   :  { %v2068_v56 = vpop.eup %2067  ;;  %2079 = vpow2.f32 %v1649_v2  ;;  %v344_v57 = vsel %vm2524_vm4, %v343_v36, %v339_v11 }
  0xbd   :  { %v362_v62 = vmul.f32 %v2068_v56, %v2480_v40  ;;  %v2512_v3 = vpop.eup %2069  ;;  %vm367_vm5 = vweird.f32 %v2068_v56  ;;  %2081 = vpow2.f32 %v1655_v6  ;;  %v247_v40 = vpop.f32.mrf.mxu2  ;;  %v557_v35 = vmul.f32 %v344_v57, %v2453_v45 }
  0xbe   :  { %v2519_v9 = vpop.eup %2071  ;;  %v317_v32 = vmul.f32 %v2512_v3, %v2482_v42  ;;  %vm368_vm7 = vmor %vm366_vm6, %vm367_vm5  ;;  %vm322_vm9 = vweird.f32 %v2512_v3 }
  0xbf   :  { %v363_v5 = vsub.f32 1.0, %v362_v62  ;;  %v2074_v31 = vpop.eup %2073  ;;  %v347_v46 = vmul.f32 %v2519_v9, %v2484_v44  ;;  %v373_v62 = vor.u32 1.1754944e-38, %v372_v16  ;;  %v1679_v16 = vor.u32 %v1981_v54, %v1678_v51  ;;  %vm2588_vm12 = vmor %vm321_vm11, %vm322_vm9 }
  0xc0   :  { %v2543_v59 = vadd.f32 1.0, %v2074_v31  ;;  %v2076_v2 = vpop.eup %2075  ;;  %v2558_v51 = vadd.f32 %v247_v40, %v2450_v39  ;;  %vm352_vm10 = vweird.f32 %v2519_v9  ;;  %vm874_vm11 = vcmask 1044480  }
  0xc1   :  { %v364_v33 = vmul.f32 %v2068_v56, %v363_v5  ;;  %v1691_v5 = vor.u32 %v1982_v41, %v1688_v43  ;;  %v2078_v31 = vpop.eup %2077  ;;  %v348_v36 = vsub.f32 1.0, %v347_v46  ;;  %v1650_v41 = vmul.f32 -1.442695, %v2547_v63  ;;  %723 = vmatpush.bf16.msrb.mxu2 %v1679_v16  ;;  %vm2599_vm14 = vmor %vm351_vm13, %vm352_vm10 }
  0xc2   :  { %v2080_v6 = vpop.eup %2079  ;;  %v1683_v43 = vor.u32 %v1980_v0, %v1680_v1  ;;  %2083 = vrcp.f32 %v2543_v59  ;;  %v2562_v45 = vadd.f32 1.0, %v2078_v31  ;;  %v327_v0 = vand.u32 2147483648, %v2482_v42 }
  0xc3   :  { %v365_v48 = vadd.f32 %v2068_v56, %v364_v33  ;;  %v318_v33 = vsub.f32 1.0, %v317_v32  ;;  %780 = vmatpush.bf16.msrb.mxu0 %v1691_v5  ;;  %v2560_v32 = vadd.f32 1.0, %v2076_v2  ;;  %2085 = vpow2.f32 %v1651_v30 }
  0xc4   :  { %v349_v54 = vmul.f32 %v2519_v9, %v348_v36  ;;  %2087 = vpow2.f32 %v1654_v21  ;;  %v2566_v57 = vadd.f32 1.0, %v2080_v6  ;;  %v355_v16 = vand.u32 2147483647, %v2484_v44 }
  0xc5   :  { %v369_v4 = vsel %vm368_vm7, %v2068_v56, %v365_v48  ;;  %v1671_v48 = vor.u32 %v1979_v7, %v1670_v8  ;;  %v319_v46 = vmul.f32 %v2512_v3, %v318_v33  ;;  %2089 = vpow2.f32 %v1650_v41  ;;  %v249_v5 = vpop.f32.mrf.mxu2  ;;  %v220_v33 = vpop.f32.mrf.mxu3 }
  0xc6   :  { %v374_v11 = vsel %vm371_vm8, %v373_v62, %v369_v4  ;;  %2091 = vrcp.f32 %v2566_v57  ;;  %v1657_v62 = vmul.f32 -1.442695, %v2558_v51  ;;  %v350_v40 = vadd.f32 %v2519_v9, %v349_v54 }
  0xc7   :  { %v559_v56 = vmul.f32 %v374_v11, %v2465_v61  ;;  %v2082_v61 = vpop.eup %2081  ;;  %781 = vmatpush.bf16.msrb.mxu0 %v1683_v43  ;;  %724 = vmatpush.bf16.msrb.mxu2 %v1671_v48  ;;  %2093 = vrcp.f32 %v2562_v45  ;;  %v320_v4 = vadd.f32 %v2512_v3, %v319_v46  ;;  %v325_v7 = vand.u32 2147483647, %v2482_v42 }
  0xc8   :  { %v2574_v1 = vadd.f32 1.0, %v2082_v61  ;;  %v2577_v2 = vpop.eup %2083  ;;  %2095 = vrcp.f32 %v2560_v32  ;;  %v357_v11 = vand.u32 2147483648, %v2484_v44  ;;  %v2595_v31 = vadd.f32 %v218_v34, %v2456_v50 }
  0xc9   :  { %v2555_v49 = vpack.c.bf16 %v559_v56, %v557_v35  ;;  %v2086_v8 = vpop.eup %2085  ;;  %2097 = vpow2.f32 %v1657_v62  ;;  %v328_v42 = vor.u32 1.1754944e-38, %v327_v0  ;;  %v2605_v56 = vadd.f32 %v249_v5, %v2450_v39 }
  0xca   :  { %v2088_v21 = vpop.eup %2087  ;;  %2099 = vrcp.f32 %v2574_v1  ;;  %v324_v44 = vsel %vm2588_vm12, %v2512_v3, %v320_v4  ;;  %v2614_v34 = vmul.f32 %v2577_v2, %v2543_v59  ;;  %v354_v41 = vsel %vm2599_vm14, %v2519_v9, %v350_v40 }
  0xcb   :  { %1740 = vmatmul.msk.bf16.vlgmr.msrb.gmra.mxu3 %vm181_vm0, %v2555_v49  ;;  %v2090_v35 = vpop.eup %2089  ;;  %v2619_v43 = vadd.f32 1.0, %v2086_v8  ;;  %v358_v39 = vor.u32 1.1754944e-38, %v357_v11  ;;  %v2623_v61 = vadd.f32 1.0, %v2088_v21  ;;  %v2628_v3 = vadd.f32 %v220_v33, %v2456_v50  ;;  %v1978_v33 = vld [vmem:[#allocation5 + $0x14] sm:$0xf] }
  0xcc   :  { %v2607_v6 = vpop.eup %2091  ;;  %vm326_vm15 = vcmp.eq.f32.partialorder %v325_v7, 8.507059e+37  ;;  %vm356_vm1 = vcmp.eq.f32.partialorder %v355_v16, 8.507059e+37  ;;  %v1656_v62 = vmul.f32 -1.442695, %v2595_v31  ;;  %v1659_v40 = vmul.f32 -1.442695, %v2605_v56 }
  0xcd   :  { %v2621_v48 = vpop.eup %2093  ;;  %v392_v46 = vmul.f32 %v2607_v6, %v2566_v57  ;;  %v329_v9 = vsel %vm326_vm15, %v328_v42, %v324_v44  ;;  %v359_v0 = vsel %vm356_vm1, %v358_v39, %v354_v41  ;;  %v2637_v21 = vadd.f32 1.0, %v2090_v35  ;;  %v1672_v44 = vld [vmem:[#allocation5 + $0x18] sm:$0xf0]  ;;  %v1994_v41 = vld [vmem:[#allocation5 + $0x94] sm:$0xf] }
  0xce   :  { %v2630_v54 = vpop.eup %2095  ;;  %v377_v11 = vmul.f32 %v2621_v48, %v2562_v45  ;;  %2101 = vrcp.f32 %v2619_v43  ;;  %v1658_v16 = vmul.f32 -1.442695, %v2628_v3  ;;  %v556_v42 = vmul.f32 %v329_v9, %v2459_v58  ;;  %v1736_v39 = vld [vmem:[#allocation5 + $0x98] sm:$0xf0] }
  0xcf   :  { %v393_v4 = vsub.f32 1.0, %v392_v46  ;;  %v2098_v5 = vpop.eup %2097  ;;  %v2644_v7 = vmul.f32 %v2630_v54, %v2560_v32  ;;  %2103 = vrcp.f32 %v2623_v61  ;;  %v558_v35 = vmul.f32 %v359_v0, %v2462_v60  ;;  %v1728_v46 = vld [vmem:[#allocation5 + $0x88] sm:$0xf0] }
  0xd0   :  { %v2640_v50 = vpop.eup %2099  ;;  %2105 = vpow2.f32 %v1656_v62  ;;  %v400_v29 = vand.u32 2147483647, %v2566_v57  ;;  %v2654_v28 = vadd.f32 1.0, %v2098_v5  ;;  %v378_v58 = vsub.f32 1.0, %v377_v11  ;;  %v1999_v62 = vld [vmem:[%s3240_s2 + $0x14] sm:$0x10] }
  0xd1   :  { %v394_v36 = vmul.f32 %v2607_v6, %v393_v4  ;;  %2107 = vpow2.f32 %v1659_v40  ;;  %v2658_v19 = vmul.f32 %v2640_v50, %v2574_v1  ;;  %v402_v60 = vand.u32 2147483648, %v2566_v57  ;;  %v1662_v4 = vld [vmem:[#allocation5] sm:$0xf] }
  0xd2   :  { %2109 = vrcp.f32 %v2637_v21  ;;  %vm397_vm2 = vweird.f32 %v2607_v6  ;;  %v1675_v18 = vor.u32 %v1978_v33, %v1672_v44  ;;  %v1739_v11 = vor.u32 %v1994_v41, %v1736_v39  ;;  %v1758_v39 = vld [vmem:[%s3240_s2 + $0x10] sm:$0xf] }
  0xd3   :  { %2111 = vpow2.f32 %v1658_v16  ;;  %v395_v40 = vadd.f32 %v2607_v6, %v394_v36  ;;  %vm396_vm3 = vweird.f32 %v2566_v57  ;;  %vm2672_vm4 = vcmp.eq.f32.partialorder %v400_v29, 8.507059e+37  ;;  %v1992_v36 = vld [vmem:[#allocation5 + $0x84] sm:$0xf] }
  0xd4   :  { %v2665_v5 = vpop.eup %2101  ;;  %2113 = vrcp.f32 %v2654_v28  ;;  %v483_v44 = vsub.f32 1.0, %v2658_v19  ;;  %v379_v41 = vmul.f32 %v2621_v48, %v378_v58  ;;  %vm381_vm5 = vweird.f32 %v2562_v45  ;;  %782 = vmatpush.bf16.msrb.mxu0 %v1675_v18  ;;  %811 = vmatpush.bf16.msrb.mxu1 %v1739_v11  ;;  %vm2695_vm7 = vmor %vm396_vm3, %vm397_vm2 }
  0xd5   :  { %v2669_v13 = vpop.eup %2103  ;;  %v422_v16 = vmul.f32 %v2665_v5, %v2619_v43  ;;  %vm382_vm6 = vweird.f32 %v2621_v48  ;;  %v403_v29 = vor.u32 1.1754944e-38, %v402_v60  ;;  %vm426_vm8 = vweird.f32 %v2619_v43 }
  0xd6   :  { %v2679_v33 = vpop.eup %2105  ;;  %v430_v18 = vand.u32 2147483647, %v2619_v43  ;;  %v432_v60 = vand.u32 2147483648, %v2619_v43  ;;  %v399_v9 = vsel %vm2695_vm7, %v2607_v6, %v395_v40  ;;  %v1663_v30 = vor.u32 %v1977_v27, %v1662_v4  ;;  %vm2746_vm1 = vmor %vm381_vm5, %vm382_vm6 }
  0xd7   :  { %v2108_v0 = vpop.eup %2107  ;;  %v423_v58 = vsub.f32 1.0, %v422_v16  ;;  %v1731_v57 = vor.u32 %v1992_v36, %v1728_v46  ;;  %v1760_v16 = vld [vmem:[%s3240_s2 + $0x18] sm:$0x10]  ;;  %vm427_vm9 = vweird.f32 %v2665_v5  ;;  %v592_v23 = vpack.c.bf16 %v558_v35, %v556_v42 }
  0xd8   :  { %v2702_v11 = vpop.eup %2109  ;;  %v1759_v19 = vor.u32 %v1999_v62, %v1758_v39  ;;  %v2717_v6 = vadd.f32 1.0, %v2108_v0  ;;  %725 = vmatpush.bf16.msrb.mxu2 %v1663_v30  ;;  %783 = vmatpush.bf16.msrb.mxu0 %v1667_v25  ;;  %vm873_vm10 = vcmask 1043456   ;;  %vm456_vm12 = vweird.f32 %v2543_v59  ;;  %vm428_vm14 = vmor %vm426_vm8, %vm427_vm9  ;;  %v1996_v39 = vld [vmem:[%s3240_s2 + $0x4] sm:$0xf] }
  0xd9   :  { %v2713_v15 = vpop.eup %2111  ;;  %v424_v14 = vmul.f32 %v2665_v5, %v423_v58  ;;  %vm457_vm13 = vweird.f32 %v2577_v2  ;;  %812 = vmatpush.bf16.msrb.mxu1 %v1731_v57  ;;  %v2288_v27 = vmov 65535   ;;  %v1763_v4 = vor.u32 %v1998_v24, %v1760_v16 }
  0xda   :  { %v2719_v17 = vpop.eup %2113  ;;  %v875_v46 = vsel %vm873_vm10, 4294967295, %v2288_v27  ;;  %v407_v42 = vmul.f32 %v2702_v11, %v2637_v21  ;;  %v484_v30 = vmul.f32 %v2640_v50, %v483_v44  ;;  %v404_v25 = vsel %vm2672_vm4, %v403_v29, %v399_v9  ;;  %v1750_v44 = vld [vmem:[%s3240_s2] sm:$0xf]  ;;  %vm2807_vm10 = vmor %vm456_vm12, %vm457_vm13 }
  0xdb   :  { %v425_v26 = vadd.f32 %v2665_v5, %v424_v14  ;;  %v433_v35 = vor.u32 1.1754944e-38, %v432_v60  ;;  %v2733_v62 = vsel %vm874_vm11, %v875_v46, 0  ;;  %v380_v14 = vadd.f32 %v2621_v48, %v379_v41  ;;  %726 = vmatmul.bf16.vlgmr.msrb.gmra.mxu2 %v592_v23  ;;  %784 = vmatmul.bf16.vlgmr.msrb.gmra.mxu0 %v592_v23 }
  0xdc   :  { %vm431_vm15 = vcmp.eq.f32.partialorder %v430_v18, 8.507059e+37  ;;  %v878_v0 = vand.u32 %v1759_v19, %v2733_v62  ;;  %2115 = vrcp.f32 %v2717_v6  ;;  %1744 = vmatmul.msk.bf16.vlgmr.msrb.gmra.mxu1 %vm181_vm0, %v2555_v49  ;;  %v881_v43 = vand.u32 %v1763_v4, %v2733_v62 }
  0xdd   :  { %v429_v24 = vsel %vm428_vm14, %v2665_v5, %v425_v26  ;;  %v408_v8 = vsub.f32 1.0, %v407_v42  ;;  %v561_v23 = vmul.f32 %v404_v25, %v2498_v53  ;;  %v415_v36 = vand.u32 2147483647, %v2637_v21 }
  0xde   :  { %v434_v40 = vsel %vm431_vm15, %v433_v35, %v429_v24  ;;  %889 = vmatpush.bf16.msra.mxu3 %v878_v0  ;;  %v417_v49 = vand.u32 2147483648, %v2637_v21  ;;  %v3281_v41 = vsub.f32 1.0, %v2614_v34  ;;  %vm486_vm2 = vweird.f32 %v2574_v1  ;;  %918 = vmatpush.bf16.msra.mxu2 %v881_v43  ;;  %v1752_v34 = vld [vmem:[%s3240_s2 + $0x8] sm:$0xf0] }
  0xdf   :  { %v563_v5 = vmul.f32 %v434_v40, %v2536_v37  ;;  %v409_v53 = vmul.f32 %v2702_v11, %v408_v8  ;;  %vm412_vm3 = vweird.f32 %v2702_v11  ;;  %v1997_v37 = vld [vmem:[%s3240_s2 + $0x4] sm:$0xf0]  ;;  %vm487_vm4 = vweird.f32 %v2640_v50 }
  0xe0   :  { %v454_v29 = vmul.f32 %v2577_v2, %v3281_v41  ;;  %v384_v58 = vsel %vm2746_vm1, %v2621_v48, %v380_v14  ;;  %v467_v60 = vmul.f32 %v2669_v13, %v2623_v61  ;;  %v3282_v57 = vand.u32 2147483647, %v2562_v45  ;;  %vm2792_vm8 = vmor %vm486_vm2, %vm487_vm4 }
  0xe1   :  { %v595_v18 = vpack.c.bf16 %v563_v5, %v561_v23  ;;  %v3283_v16 = vand.u32 2147483648, %v2562_v45  ;;  %v410_v26 = vadd.f32 %v2702_v11, %v409_v53  ;;  %vm411_vm6 = vweird.f32 %v2637_v21 }
  0xe2   :  { %vm386_vm5 = vcmp.eq.f32.partialorder %v3282_v57, 8.507059e+37  ;;  %v485_v27 = vadd.f32 %v2640_v50, %v484_v30  ;;  %vm413_vm7 = vmor %vm411_vm6, %vm412_vm3  ;;  %v418_v46 = vor.u32 1.1754944e-38, %v417_v49  ;;  %v1751_v48 = vor.u32 %v1997_v37, %v1750_v44  ;;  %v2786_v42 = vpop.eup %2115 }
  0xe3   :  { %v388_v19 = vor.u32 1.1754944e-38, %v3283_v16  ;;  %1741 = vmatmul.msk.bf16.gmra.mxu3 %vm181_vm0, %v595_v18  ;;  %v1755_v4 = vor.u32 %v1996_v39, %v1752_v34  ;;  %v2797_v21 = vadd.f32 1.0, %v2713_v15  ;;  %v414_v30 = vsel %vm413_vm7, %v2702_v11, %v410_v26  ;;  %v120_v26 = vld [vmem:[%s3238_s0 + $0x28] sm:$0xff] }
  0xe4   :  { %vm416_vm9 = vcmp.eq.f32.partialorder %v415_v36, 8.507059e+37  ;;  %v455_v35 = vadd.f32 %v2577_v2, %v454_v29  ;;  %v460_v14 = vand.u32 2147483647, %v2543_v59  ;;  %v468_v0 = vsub.f32 1.0, %v467_v60  ;;  %890 = vmatpush.bf16.msra.mxu3 %v1751_v48 }
  0xe5   :  { %v389_v25 = vsel %vm386_vm5, %v388_v19, %v384_v58  ;;  %v419_v24 = vsel %vm416_vm9, %v418_v46, %v414_v30  ;;  %919 = vmatpush.bf16.msra.mxu2 %v1755_v4  ;;  %v438_v40 = vsub.f32 1.0, %v2644_v7  ;;  %v3288_v11 = vand.u32 2147483648, %v2574_v1 }
  0xe6   :  { %v2814_v8 = vadd.f32 1.0, %v2679_v33  ;;  %v562_v9 = vmul.f32 %v419_v24, %v2547_v63  ;;  %v489_v7 = vsel %vm2792_vm8, %v2640_v50, %v485_v27  ;;  %v3289_v23 = vand.u32 2147483647, %v2574_v1 }
  0xe7   :  { %v493_v43 = vor.u32 1.1754944e-38, %v3288_v11  ;;  %v560_v5 = vmul.f32 %v389_v25, %v2494_v52  ;;  %v542_v36 = vmul.f32 %v2786_v42, %v2717_v6  ;;  %v3290_v49 = vand.u32 2147483648, %v2543_v59 }
  0xe8   :  { %vm491_vm11 = vcmp.eq.f32.partialorder %v3289_v23, 8.507059e+37  ;;  %v512_v33 = vmul.f32 %v2719_v17, %v2654_v28  ;;  %2117 = vrcp.f32 %v2797_v21  ;;  %v459_v63 = vsel %vm2807_vm10, %v2577_v2, %v455_v35 }
  0xe9   :  { %v463_v44 = vor.u32 1.1754944e-38, %v3290_v49  ;;  %vm461_vm12 = vcmp.eq.f32.partialorder %v460_v14, 8.507059e+37  ;;  %v594_v1 = vpack.c.bf16 %v562_v9, %v560_v5  ;;  %v469_v50 = vmul.f32 %v2669_v13, %v468_v0 }
  0xea   :  { %v439_v52 = vmul.f32 %v2630_v54, %v438_v40  ;;  %vm441_vm13 = vweird.f32 %v2560_v32  ;;  %v494_v41 = vsel %vm491_vm11, %v493_v43, %v489_v7  ;;  %2119 = vrcp.f32 %v2814_v8 }
  0xeb   :  { %v445_v59 = vand.u32 2147483647, %v2560_v32  ;;  %v543_v29 = vsub.f32 1.0, %v542_v36  ;;  %vm471_vm14 = vweird.f32 %v2623_v61  ;;  %vm472_vm15 = vweird.f32 %v2669_v13  ;;  %731 = vmatmul.bf16.gmra.mxu2 %v594_v1  ;;  %789 = vmatmul.bf16.gmra.mxu0 %v594_v1 }
  0xec   :  { %vm442_vm1 = vweird.f32 %v2630_v54  ;;  %v464_v2 = vsel %vm461_vm12, %v463_v44, %v459_v63  ;;  %v513_v53 = vsub.f32 1.0, %v512_v33  ;;  %v477_v37 = vand.u32 2147483648, %v2623_v61  ;;  %1745 = vmatmul.msk.bf16.gmra.mxu1 %vm181_vm0, %v595_v18  ;;  %vm2852_vm2 = vmor %vm471_vm14, %vm472_vm15 }
  0xed   :  { %v567_v39 = vmul.f32 %v494_v41, %v2502_v55  ;;  %v470_v34 = vadd.f32 %v2669_v13, %v469_v50  ;;  %v475_v58 = vand.u32 2147483647, %v2623_v61  ;;  %v440_v57 = vadd.f32 %v2630_v54, %v439_v52  ;;  %vm2858_vm3 = vmor %vm441_vm13, %vm442_vm1  ;;  %v119_v55 = vld [vmem:[%s3238_s0 + $0x20] sm:$0xff] }
  0xee   :  { %v2845_v60 = vpop.eup %2117  ;;  %v447_v16 = vand.u32 2147483648, %v2560_v32  ;;  %vm2862_vm4 = vcmp.eq.f32.partialorder %v445_v59, 8.507059e+37  ;;  %v565_v27 = vmul.f32 %v464_v2, %v2478_v38  ;;  %v544_v18 = vmul.f32 %v2786_v42, %v543_v29 }
  0xef   :  { %v514_v61 = vmul.f32 %v2719_v17, %v513_v53  ;;  %vm546_vm5 = vweird.f32 %v2717_v6  ;;  %vm547_vm6 = vweird.f32 %v2786_v42  ;;  %v478_v32 = vor.u32 1.1754944e-38, %v477_v37 }
  0xf0   :  { %v2868_v46 = vpop.eup %2119  ;;  %v474_v48 = vsel %vm2852_vm2, %v2669_v13, %v470_v34  ;;  %vm476_vm7 = vcmp.eq.f32.partialorder %v475_v58, 8.507059e+37  ;;  %v597_v4 = vpack.c.bf16 %v567_v39, %v565_v27  ;;  %v527_v38 = vmul.f32 %v2845_v60, %v2797_v21  ;;  %vm2894_vm10 = vmor %vm546_vm5, %vm547_vm6 }
  0xf1   :  { %v444_v45 = vsel %vm2858_vm3, %v2630_v54, %v440_v57  ;;  %v448_v25 = vor.u32 1.1754944e-38, %v447_v16  ;;  %vm516_vm8 = vweird.f32 %v2654_v28  ;;  %v552_v30 = vand.u32 2147483648, %v2717_v6  ;;  %v1814_v54 = vld [vmem:[#allocation7 + $0x50] sm:$0xf] }
  0xf2   :  { %v497_v35 = vmul.f32 %v2868_v46, %v2814_v8  ;;  %vm517_vm9 = vweird.f32 %v2719_v17  ;;  %v545_v13 = vadd.f32 %v2786_v42, %v544_v18  ;;  %v550_v14 = vand.u32 2147483647, %v2717_v6  ;;  %v121_v18 = vld [vmem:[%s3238_s0 + $0x30] sm:$0xff] }
  0xf3   :  { %1742 = vmatmul.msk.bf16.gmra.mxu3 %vm181_vm0, %v597_v4  ;;  %v522_v24 = vand.u32 2147483648, %v2654_v28  ;;  %v479_v0 = vsel %vm476_vm7, %v478_v32, %v474_v48  ;;  %v515_v40 = vadd.f32 %v2719_v17, %v514_v61  ;;  %v520_v15 = vand.u32 2147483647, %v2654_v28  ;;  %vm2902_vm11 = vmor %vm516_vm8, %vm517_vm9  ;;  %v1830_v32 = vld [vmem:[#allocation7 + $0x70] sm:$0xf] }
  0xf4   :  { %v528_v11 = vsub.f32 1.0, %v527_v38  ;;  %v449_v43 = vsel %vm2862_vm4, %v448_v25, %v444_v45  ;;  %v553_v7 = vor.u32 1.1754944e-38, %v552_v30  ;;  %v498_v23 = vsub.f32 1.0, %v497_v35  ;;  %v2015_v48 = vld [vmem:[#allocation7 + $0x74] sm:$0xf0] }
  0xf5   :  { %v549_v6 = vsel %vm2894_vm10, %v2786_v42, %v545_v13  ;;  %vm551_vm12 = vcmp.eq.f32.partialorder %v550_v14, 8.507059e+37  ;;  %v566_v5 = vmul.f32 %v479_v0, %v2530_v20  ;;  %v523_v36 = vor.u32 1.1754944e-38, %v522_v24  ;;  %v2019_v45 = vld [vmem:[#allocation7 + $0x94] sm:$0xf0]  ;;  %v1822_v35 = vld [vmem:[#allocation7 + $0x60] sm:$0xf] }
  0xf6   :  { %v564_v28 = vmul.f32 %v449_v43, %v2488_v47  ;;  %v519_v49 = vsel %vm2902_vm11, %v2719_v17, %v515_v40  ;;  %vm521_vm13 = vcmp.eq.f32.partialorder %v520_v15, 8.507059e+37  ;;  %v529_v44 = vmul.f32 %v2845_v60, %v528_v11  ;;  %v2013_v13 = vld [vmem:[#allocation7 + $0x64] sm:$0xf0]  ;;  %v2011_v0 = vld [vmem:[#allocation7 + $0x54] sm:$0xf0] }
  0xf7   :  { %v554_v33 = vsel %vm551_vm12, %v553_v7, %v549_v6  ;;  %v499_v63 = vmul.f32 %v2868_v46, %v498_v23  ;;  %vm531_vm14 = vweird.f32 %v2797_v21  ;;  %vm532_vm15 = vweird.f32 %v2845_v60  ;;  %v1806_v11 = vld [vmem:[#allocation7 + $0x40] sm:$0xf]  ;;  %v2009_v43 = vld [vmem:[#allocation7 + $0x44] sm:$0xf0]  ;;  %v1798_v6 = vld [vmem:[#allocation7 + $0x30] sm:$0xf] }
  0xf8   :  { %v596_v1 = vpack.c.bf16 %v566_v5, %v564_v28  ;;  %vm501_vm1 = vweird.f32 %v2814_v8  ;;  %v524_v20 = vsel %vm521_vm13, %v523_v36, %v519_v49  ;;  %v537_v47 = vand.u32 2147483648, %v2797_v21  ;;  %vm533_vm3 = vmor %vm531_vm14, %vm532_vm15  ;;  %v2007_v5 = vld [vmem:[#allocation7 + $0x34] sm:$0xf0]  ;;  %v1838_v36 = vld [vmem:[#allocation7 + $0x80] sm:$0xf] }
  0xf9   :  { %vm502_vm2 = vweird.f32 %v2868_v46  ;;  %v571_v17 = vmul.f32 %v554_v33, %v2605_v56  ;;  %v530_v42 = vadd.f32 %v2845_v60, %v529_v44  ;;  %v535_v50 = vand.u32 2147483647, %v2797_v21  ;;  %v2017_v44 = vld [vmem:[#allocation7 + $0x84] sm:$0xf0]  ;;  %v2014_v33 = vld [vmem:[#allocation7 + $0x74] sm:$0xf] }
  0xfa   :  { %v507_v52 = vand.u32 2147483648, %v2814_v8  ;;  %v500_v41 = vadd.f32 %v2868_v46, %v499_v63  ;;  %v505_v59 = vand.u32 2147483647, %v2814_v8  ;;  %v569_v29 = vmul.f32 %v524_v20, %v2558_v51  ;;  %vm503_vm4 = vmor %vm501_vm1, %vm502_vm2  ;;  %v115_v8 = vld [vmem:[%s3238_s0] sm:$0xff]  ;;  %v1832_v63 = vld [vmem:[#allocation7 + $0x78] sm:$0xf0] }
  0xfb   :  { %736 = vmatmul.bf16.gmra.mxu2 %v596_v1  ;;  %794 = vmatmul.bf16.gmra.mxu0 %v596_v1  ;;  %v538_v56 = vor.u32 1.1754944e-38, %v537_v47  ;;  %v534_v2 = vsel %vm533_vm3, %v2845_v60, %v530_v42  ;;  %vm536_vm5 = vcmp.eq.f32.partialorder %v535_v50, 8.507059e+37  ;;  %v116_v60 = vld [vmem:[%s3238_s0 + $0x8] sm:$0xff]  ;;  %vm860_vm7 = vcmask 203776   ;;  %v1790_v50 = vld [vmem:[#allocation7 + $0x20] sm:$0xf] }
  0xfc   :  { %1746 = vmatmul.msk.bf16.gmra.mxu1 %vm181_vm0, %v597_v4  ;;  %v599_v53 = vpack.c.bf16 %v571_v17, %v569_v29  ;;  %v508_v21 = vor.u32 1.1754944e-38, %v507_v52  ;;  %v504_v37 = vsel %vm503_vm4, %v2868_v46, %v500_v41  ;;  %vm506_vm6 = vcmp.eq.f32.partialorder %v505_v59, 8.507059e+37  ;;  %v122_v46 = vld [vmem:[%s3238_s0 + $0x38] sm:$0xff]  ;;  %v1846_v4 = vld [vmem:[#allocation7 + $0x90] sm:$0xf] }
  0xfd   :  { %v539_v39 = vsel %vm536_vm5, %v538_v56, %v534_v2  ;;  %v2943_v16 = vpack.c.bf16 %v116_v60, %v115_v8  ;;  %v2967_v27 = vpack.c.bf16 %v120_v26, %v119_v55  ;;  %v2979_v61 = vpack.c.bf16 %v122_v46, %v121_v18  ;;  %v2012_v17 = vld [vmem:[#allocation7 + $0x64] sm:$0xf]  ;;  %v1824_v42 = vld [vmem:[#allocation7 + $0x68] sm:$0xf0]  ;;  %v2005_v59 = vld [vmem:[#allocation7 + $0x24] sm:$0xf0] }
  0xfe   :  { %v509_v34 = vsel %vm506_vm6, %v508_v21, %v504_v37  ;;  %v570_v58 = vmul.f32 %v539_v39, %v2628_v3  ;;  %v118_v3 = vld [vmem:[%s3238_s0 + $0x18] sm:$0xff]  ;;  %v1831_v38 = vor.u32 %v2015_v48, %v1830_v32  ;;  %v1847_v25 = vor.u32 %v2019_v45, %v1846_v4  ;;  %v2010_v29 = vld [vmem:[#allocation7 + $0x54] sm:$0xf]  ;;  %v2008_v37 = vld [vmem:[#allocation7 + $0x44] sm:$0xf] }
  0xff   :  { %v568_v51 = vmul.f32 %v509_v34, %v2595_v31  ;;  %v117_v31 = vld [vmem:[%s3238_s0 + $0x10] sm:$0xff]  ;;  %v1823_v14 = vor.u32 %v2013_v13, %v1822_v35  ;;  %v1815_v40 = vor.u32 %v2011_v0, %v1814_v54  ;;  %v1807_v7 = vor.u32 %v2009_v43, %v1806_v11  ;;  %v1816_v56 = vld [vmem:[#allocation7 + $0x58] sm:$0xf0]  ;;  %v1808_v39 = vld [vmem:[#allocation7 + $0x48] sm:$0xf0] }
 0x100   :  { %v2955_v19 = vpack.c.bf16 %v118_v3, %v117_v31  ;;  %1097 = vmatpush.bf16.msra.mxu0 %v1831_v38  ;;  %1132 = vmatpush.bf16.msra.mxu1 %v1847_v25  ;;  %v1799_v49 = vor.u32 %v2007_v5, %v1798_v6  ;;  %v1839_v1 = vor.u32 %v2017_v44, %v1838_v36  ;;  %v1782_v34 = vld [vmem:[#allocation7 + $0x10] sm:$0xf]  ;;  %v2006_v8 = vld [vmem:[#allocation7 + $0x34] sm:$0xf]  ;;  %v1800_v60 = vld [vmem:[#allocation7 + $0x38] sm:$0xf0] }
 0x101   :  { %v598_v57 = vpack.c.bf16 %v570_v58, %v568_v51  ;;  %v1835_v20 = vor.u32 %v2014_v33, %v1832_v63  ;;  %v1827_v41 = vor.u32 %v2012_v17, %v1824_v42  ;;  %v1791_v2 = vor.u32 %v2005_v59, %v1790_v50  ;;  %v2003_v51 = vld [vmem:[#allocation7 + $0x14] sm:$0xf0]  ;;  %v2004_v26 = vld [vmem:[#allocation7 + $0x24] sm:$0xf]  ;;  %v1792_v18 = vld [vmem:[#allocation7 + $0x28] sm:$0xf0] }
 0x102   :  { %v1819_v21 = vor.u32 %v2010_v29, %v1816_v56  ;;  %v1811_v58 = vor.u32 %v2008_v37, %v1808_v39  ;;  %v1803_v55 = vor.u32 %v2006_v8, %v1800_v60  ;;  %v1774_v46 = vld [vmem:[#allocation7] sm:$0xf]  ;;  %v2001_v32 = vld [vmem:[#allocation7 + $0x4] sm:$0xf0]  ;;  %v2018_v48 = vld [vmem:[#allocation7 + $0x94] sm:$0xf]  ;;  %v1795_v25 = vor.u32 %v2004_v26, %v1792_v18 }
 0x103   :  { %1743 = vmatmul.msk.bf16.gmra.mxu3 %vm181_vm0, %v599_v53  ;;  %v1848_v4 = vld [vmem:[#allocation7 + $0x98] sm:$0xf0]  ;;  %v1775_v38 = vor.u32 %v2001_v32, %v1774_v46  ;;  %v2002_v35 = vld [vmem:[#allocation7 + $0x14] sm:$0xf]  ;;  %v2000_v11 = vld [vmem:[#allocation7 + $0x4] sm:$0xf] }
 0x104   :  { %1098 = vmatpush.bf16.msra.mxu0 %v1823_v14  ;;  %1133 = vmatpush.bf16.msra.mxu1 %v1839_v1  ;;  %v1851_v45 = vor.u32 %v2018_v48, %v1848_v4  ;;  %v1784_v13 = vld [vmem:[#allocation7 + $0x18] sm:$0xf0]  ;;  %v1776_v43 = vld [vmem:[#allocation7 + $0x8] sm:$0xf0]  ;;  %v2035_v44 = vld [vmem:[#allocation8 + $0x74] sm:$0xf0] }
 0x105   :  { %1155 = vmatpush.bf16.msrb.mxu3 %v1835_v20  ;;  %v1787_v0 = vor.u32 %v2002_v35, %v1784_v13  ;;  %v1779_v6 = vor.u32 %v2000_v11, %v1776_v43  ;;  %v1840_v5 = vld [vmem:[#allocation7 + $0x88] sm:$0xf0]  ;;  %v1934_v33 = vld [vmem:[#allocation8 + $0x90] sm:$0xf]  ;;  %v2039_v20 = vld [vmem:[#allocation8 + $0x94] sm:$0xf0] }
 0x106   :  { %1190 = vmatpush.bf16.msrb.mxu2 %v1851_v45  ;;  %v1935_v17 = vor.u32 %v2039_v20, %v1934_v33  ;;  %v2033_v59 = vld [vmem:[#allocation8 + $0x64] sm:$0xf0]  ;;  %v600_v56 = vld [vmem:[%s3244_s6] sm:$0x3]  ;;  %v1902_v60 = vld [vmem:[#allocation8 + $0x50] sm:$0xf] }
 0x107   :  { %v3028_v32 = vperm.slane %v600_v56, 1  ;;  %v1894_v45 = vld [vmem:[#allocation8 + $0x40] sm:$0xf]  ;;  %v2027_v20 = vld [vmem:[#allocation8 + $0x34] sm:$0xf0] }
 0x108   :  { %1099 = vmatpush.bf16.msra.mxu0 %v1815_v40  ;;  %1368 = vmatpush.bf16.msrb.mxu1 %v1935_v17 }
 0x109   :  { %1156 = vmatpush.bf16.msrb.mxu3 %v1827_v41  ;;  %v1910_v41 = vld [vmem:[#allocation8 + $0x60] sm:$0xf] }
 0x10a   :  { %v1911_v29 = vor.u32 %v2033_v59, %v1910_v41  ;;  %v2037_v41 = vld [vmem:[#allocation8 + $0x84] sm:$0xf0]  ;;  %v2034_v59 = vld [vmem:[#allocation8 + $0x74] sm:$0xf] }
 0x10b   :  { %741 = vmatmul.bf16.gmra.mxu2 %v598_v57  ;;  %799 = vmatmul.bf16.gmra.mxu0 %v598_v57  ;;  %v1783_v57 = vor.u32 %v2003_v51, %v1782_v34 }
 0x10c   :  { %1747 = vmatmul.msk.bf16.gmra.mxu1 %vm181_vm0, %v599_v53  ;;  %1100 = vmatpush.bf16.msra.mxu0 %v1807_v7  ;;  %v2016_v7 = vld [vmem:[#allocation7 + $0x84] sm:$0xf] }
 0x10d   :  { %1157 = vmatpush.bf16.msrb.mxu3 %v1819_v21  ;;  %v1843_v36 = vor.u32 %v2016_v7, %v1840_v5  ;;  %v3018_v21 = vperm.slane %v600_v56, 0 }
 0x10f   :  { %1191 = vmatpush.bf16.msrb.mxu2 %v1843_v36 }
 0x110   :  { %1101 = vmatpush.bf16.msra.mxu0 %v1799_v49  ;;  %v1918_v49 = vld [vmem:[#allocation8 + $0x70] sm:$0xf] }
 0x111   :  { %1158 = vmatpush.bf16.msrb.mxu3 %v1811_v58  ;;  %v1919_v1 = vor.u32 %v2035_v44, %v1918_v49 }
 0x113   :  { %1764 = vmatmul.msk.bf16.vlgmr.msra.gmra.mxu3 %vm860_vm7, %v2943_v16 }
 0x114   :  { %1102 = vmatpush.bf16.msra.mxu0 %v1791_v2 }
 0x115   :  { %1159 = vmatpush.bf16.msrb.mxu3 %v1803_v55  ;;  %v2031_v55 = vld [vmem:[#allocation8 + $0x54] sm:$0xf0] }
 0x116   :  { %v1903_v46 = vor.u32 %v2031_v55, %v1902_v60  ;;  %v2025_v55 = vld [vmem:[#allocation8 + $0x24] sm:$0xf0] }
 0x118   :  { %1103 = vmatpush.bf16.msra.mxu0 %v1783_v57 }
 0x119   :  { %1160 = vmatpush.bf16.msrb.mxu3 %v1795_v25 }
 0x11b   :  { %1768 = vmatmul.msk.bf16.vlgmr.msra.gmra.mxu2 %vm860_vm7, %v2943_v16 }
 0x11c   :  { %1104 = vmatpush.bf16.msra.mxu0 %v1775_v38 }
 0x11d   :  { %1161 = vmatpush.bf16.msrb.mxu3 %v1787_v0 }
 0x120   :  { %1333 = vmatpush.bf16.msrb.mxu0 %v1919_v1  ;;  %v1886_v1 = vld [vmem:[#allocation8 + $0x30] sm:$0xf] }
 0x121   :  { %1162 = vmatpush.bf16.msrb.mxu3 %v1779_v6 }
 0x123   :  { %1765 = vmatmul.msk.bf16.gmra.mxu3 %vm860_vm7, %v2955_v19 }
 0x124   :  { %1334 = vmatpush.bf16.msrb.mxu0 %v1911_v29  ;;  %v1920_v29 = vld [vmem:[#allocation8 + $0x78] sm:$0xf0] }
 0x128   :  { %1335 = vmatpush.bf16.msrb.mxu0 %v1903_v46  ;;  %v1904_v46 = vld [vmem:[#allocation8 + $0x58] sm:$0xf0] }
 0x12b   :  { %1769 = vmatmul.msk.bf16.gmra.mxu2 %vm860_vm7, %v2955_v19 }
 0x133   :  { %1766 = vmatmul.msk.bf16.gmra.mxu3 %vm860_vm7, %v2967_v27 }
 0x13b   :  { %1770 = vmatmul.msk.bf16.gmra.mxu2 %vm860_vm7, %v2967_v27 }
 0x143   :  { %1767 = vmatmul.msk.bf16.gmra.mxu3 %vm860_vm7, %v2979_v61 }
 0x14b   :  { %1771 = vmatmul.msk.bf16.gmra.mxu2 %vm860_vm7, %v2979_v61 }
 0x14e   :  { %v2985_v30 = vpop.f32.mrf.mxu3 }
 0x156   :  { %v2987_v24 = vpop.f32.mrf.mxu3 }
 0x158   :  { %v785_v40 = vpop.f32.mrf.mxu0 }
 0x159   :  { %v814_v42 = vpop.f32.mrf.mxu1 }
 0x15e   :  { %v2989_v15 = vpop.f32.mrf.mxu2 }
 0x15f   :  { %v728_v34 = vadd.f32 %v2989_v15, %v3018_v21 }
 0x160   :  { %v787_v2 = vpop.f32.mrf.mxu0 }
 0x161   :  { %v816_v51 = vpop.f32.mrf.mxu1  ;;  %v757_v57 = vadd.f32 %v2985_v30, %v728_v34  ;;  %v786_v30 = vadd.f32 %v785_v40, %v3028_v32 }
 0x163   :  { %v815_v0 = vadd.f32 %v814_v42, %v786_v30 }
 0x166   :  { %v2991_v9 = vpop.f32.mrf.mxu3  ;;  %v2993_v23 = vpop.f32.mrf.mxu2 }
 0x167   :  { %v730_v58 = vadd.f32 %v2993_v23, %v3018_v21  ;;  %v2029_v23 = vld [vmem:[#allocation8 + $0x44] sm:$0xf0] }
 0x168   :  { %v790_v26 = vpop.f32.mrf.mxu0  ;;  %v1895_v25 = vor.u32 %v2029_v23, %v1894_v45 }
 0x169   :  { %v759_v8 = vadd.f32 %v2987_v24, %v730_v58  ;;  %v788_v24 = vadd.f32 %v787_v2, %v3028_v32  ;;  %v819_v35 = vpop.f32.mrf.mxu1  ;;  %v2032_v58 = vld [vmem:[#allocation8 + $0x64] sm:$0xf] }
 0x16a   :  { %1336 = vmatpush.bf16.msrb.mxu0 %v1895_v25 }
 0x16b   :  { %v817_v11 = vadd.f32 %v816_v51, %v788_v24  ;;  %v1912_v51 = vld [vmem:[#allocation8 + $0x68] sm:$0xf0] }
 0x16c   :  { %v1915_v60 = vor.u32 %v2032_v58, %v1912_v51  ;;  %v2036_v58 = vld [vmem:[#allocation8 + $0x84] sm:$0xf] }
 0x16e   :  { %v2995_v28 = vpop.f32.mrf.mxu3  ;;  %v2997_v47 = vpop.f32.mrf.mxu2 }
 0x16f   :  { %v733_v6 = vadd.f32 %v2997_v47, %v3018_v21  ;;  %v1926_v47 = vld [vmem:[#allocation8 + $0x80] sm:$0xf] }
 0x170   :  { %v792_v43 = vpop.f32.mrf.mxu0 }
 0x171   :  { %v762_v44 = vadd.f32 %v2991_v9, %v733_v6  ;;  %v821_v17 = vpop.f32.mrf.mxu1  ;;  %v1927_v9 = vor.u32 %v2037_v41, %v1926_v47  ;;  %v2028_v6 = vld [vmem:[#allocation8 + $0x44] sm:$0xf]  ;;  %v1888_v47 = vld [vmem:[#allocation8 + $0x38] sm:$0xf0] }
 0x173   :  { %1369 = vmatpush.bf16.msrb.mxu1 %v1927_v9  ;;  %v1936_v9 = vld [vmem:[#allocation8 + $0x98] sm:$0xf0] }
 0x176   :  { %v2999_v52 = vpop.f32.mrf.mxu3  ;;  %v3001_v53 = vpop.f32.mrf.mxu2 }
 0x177   :  { %v735_v5 = vadd.f32 %v3001_v53, %v3018_v21  ;;  %v1887_v53 = vor.u32 %v2027_v20, %v1886_v1 }
 0x179   :  { %v764_v33 = vadd.f32 %v2995_v28, %v735_v5  ;;  %1337 = vmatpush.bf16.msrb.mxu0 %v1887_v53  ;;  %v824_v24 = vpop.f32.mrf.mxu1  ;;  %v1896_v5 = vld [vmem:[#allocation8 + $0x48] sm:$0xf0] }
 0x17e   :  { %v3003_v31 = vpop.f32.mrf.mxu3  ;;  %v3005_v3 = vpop.f32.mrf.mxu2 }
 0x181   :  { %v826_v51 = vpop.f32.mrf.mxu1 }
 0x186   :  { %v3007_v14 = vpop.f32.mrf.mxu3  ;;  %v3009_v54 = vpop.f32.mrf.mxu2 }
 0x18e   :  { %v3011_v63 = vpop.f32.mrf.mxu3  ;;  %v3013_v50 = vpop.f32.mrf.mxu2 }
 0x196   :  { %v892_v37 = vpop.f32.mrf.mxu3  ;;  %v3020_v39 = vpop.f32.mrf.mxu2 }
 0x197   :  { %v941_v48 = vmul.f32 %v892_v37, %v757_v57  ;;  %v1923_v37 = vor.u32 %v2034_v59, %v1920_v29  ;;  %v1878_v57 = vld [vmem:[#allocation8 + $0x20] sm:$0xf]  ;;  %v2038_v29 = vld [vmem:[#allocation8 + $0x94] sm:$0xf] }
 0x198   :  { %v1862_v59 = vld [vmem:[#allocation8] sm:$0xf] }
 0x199   :  { %1391 = vmatpush.bf16.msra.mxu3 %v1923_v37 }
 0x19d   :  { %1392 = vmatpush.bf16.msra.mxu3 %v1915_v60  ;;  %v1928_v60 = vld [vmem:[#allocation8 + $0x88] sm:$0xf0] }
 0x19e   :  { %v894_v18 = vpop.f32.mrf.mxu3  ;;  %v921_v38 = vpop.f32.mrf.mxu2 }
 0x19f   :  { %v943_v4 = vmul.f32 %v894_v18, %v759_v8  ;;  %v942_v40 = vmul.f32 %v921_v38, %v815_v0  ;;  %v795_v8 = vpop.f32.mrf.mxu0  ;;  %v2030_v18 = vld [vmem:[#allocation8 + $0x54] sm:$0xf]  ;;  %v1879_v38 = vor.u32 %v2025_v55, %v1878_v57  ;;  %v738_v0 = vadd.f32 %v3005_v3, %v3018_v21  ;;  %v1870_v3 = vld [vmem:[#allocation8 + $0x10] sm:$0xf] }
 0x1a0   :  { %v1907_v45 = vor.u32 %v2030_v18, %v1904_v46  ;;  %v796_v55 = vadd.f32 %v795_v8, %v3028_v32  ;;  %v2022_v46 = vld [vmem:[#allocation8 + $0x14] sm:$0xf] }
 0x1a1   :  { %v3030_v15 = vpack.c.bf16 %v943_v4, %v941_v48  ;;  %v791_v48 = vadd.f32 %v790_v26, %v3028_v32  ;;  %v793_v4 = vadd.f32 %v792_v43, %v3028_v32  ;;  %1338 = vmatpush.bf16.msrb.mxu0 %v1879_v38  ;;  %v740_v26 = vadd.f32 %v3009_v54, %v3018_v21  ;;  %v2023_v54 = vld [vmem:[#allocation8 + $0x14] sm:$0xf0] }
 0x1a2   :  { %1393 = vmatpush.bf16.msra.mxu3 %v1907_v45  ;;  %v1871_v20 = vor.u32 %v2023_v54, %v1870_v3  ;;  %v2043_v3 = vld [vmem:[#allocation10 + $0x14] sm:$0x10] }
 0x1a3   :  { %1105 = vmatmul.bf16.vlgmr.msra.gmra.mxu0 %v3030_v15  ;;  %1163 = vmatmul.bf16.vlgmr.msrb.gmra.mxu3 %v3030_v15  ;;  %v820_v25 = vadd.f32 %v819_v35, %v791_v48  ;;  %v822_v30 = vadd.f32 %v821_v17, %v793_v4  ;;  %v767_v35 = vadd.f32 %v2999_v52, %v738_v0  ;;  %v2024_v17 = vld [vmem:[#allocation8 + $0x24] sm:$0xf]  ;;  %v1872_v48 = vld [vmem:[#allocation8 + $0x18] sm:$0xf0]  ;;  %v1864_v0 = vld [vmem:[#allocation8 + $0x8] sm:$0xf0] }
 0x1a4   :  { %v1931_v4 = vor.u32 %v2036_v58, %v1928_v60 }
 0x1a5   :  { %1339 = vmatpush.bf16.msrb.mxu0 %v1871_v20 }
 0x1a6   :  { %v897_v13 = vpop.f32.mrf.mxu3  ;;  %v923_v7 = vpop.f32.mrf.mxu2 }
 0x1a7   :  { %v944_v36 = vmul.f32 %v923_v7, %v817_v11  ;;  %v945_v56 = vmul.f32 %v897_v13, %v762_v44  ;;  %v769_v44 = vadd.f32 %v3003_v31, %v740_v26  ;;  %v2021_v31 = vld [vmem:[#allocation8 + $0x4] sm:$0xf0]  ;;  %v743_v26 = vadd.f32 %v3013_v50, %v3018_v21  ;;  %v2042_v50 = vld [vmem:[#allocation10 + $0x14] sm:$0xf] }
 0x1a9   :  { %v3040_v49 = vpack.c.bf16 %v944_v36, %v942_v40  ;;  %v797_v40 = vpop.f32.mrf.mxu0  ;;  %v1899_v36 = vor.u32 %v2028_v6, %v1896_v5 }
 0x1aa   :  { %v798_v18 = vadd.f32 %v797_v40, %v3028_v32 }
 0x1ab   :  { %1852 = vmatmul.msk.bf16.vlgmr.msra.gmra.mxu1 %vm181_vm0, %v3040_v49  ;;  %1856 = vmatmul.msk.bf16.vlgmr.msrb.gmra.mxu2 %vm181_vm0, %v3040_v49 }
 0x1ac   :  { %1394 = vmatpush.bf16.msra.mxu3 %v1899_v36  ;;  %v829_v36 = vpop.f32.mrf.mxu1 }
 0x1ae   :  { %v899_v42 = vpop.f32.mrf.mxu3  ;;  %v926_v28 = vpop.f32.mrf.mxu2 }
 0x1af   :  { %v947_v2 = vmul.f32 %v899_v42, %v764_v33  ;;  %v946_v11 = vmul.f32 %v926_v28, %v820_v25  ;;  %v2026_v33 = vld [vmem:[#allocation8 + $0x34] sm:$0xf]  ;;  %v1880_v42 = vld [vmem:[#allocation8 + $0x28] sm:$0xf0]  ;;  %v1939_v28 = vor.u32 %v2038_v29, %v1936_v9  ;;  %v825_v25 = vadd.f32 %v824_v24, %v796_v55 }
 0x1b0   :  { %v1891_v52 = vor.u32 %v2026_v33, %v1888_v47  ;;  %v1883_v57 = vor.u32 %v2024_v17, %v1880_v42 }
 0x1b1   :  { %v3048_v34 = vpack.c.bf16 %v947_v2, %v945_v56  ;;  %v1863_v2 = vor.u32 %v2021_v31, %v1862_v59  ;;  %1426 = vmatpush.bf16.msra.mxu2 %v1939_v28  ;;  %v800_v38 = vpop.f32.mrf.mxu0  ;;  %v2040_v28 = vld [vmem:[#allocation10 + $0x4] sm:$0xf] }
 0x1b2   :  { %1395 = vmatpush.bf16.msra.mxu3 %v1891_v52 }
 0x1b3   :  { %1110 = vmatmul.bf16.gmra.mxu0 %v3048_v34  ;;  %1168 = vmatmul.bf16.gmra.mxu3 %v3048_v34 }
 0x1b4   :  { %1340 = vmatpush.bf16.msrb.mxu0 %v1863_v2  ;;  %v831_v52 = vpop.f32.mrf.mxu1 }
 0x1b5   :  { %1427 = vmatpush.bf16.msra.mxu2 %v1931_v4 }
 0x1b6   :  { %v902_v23 = vpop.f32.mrf.mxu3  ;;  %v928_v13 = vpop.f32.mrf.mxu2  ;;  %1396 = vmatpush.bf16.msra.mxu3 %v1883_v57 }
 0x1b7   :  { %v948_v43 = vmul.f32 %v928_v13, %v822_v30  ;;  %v949_v53 = vmul.f32 %v902_v23, %v767_v35  ;;  %v1875_v23 = vor.u32 %v2022_v46, %v1872_v48  ;;  %v827_v30 = vadd.f32 %v826_v51, %v798_v18  ;;  %v2020_v13 = vld [vmem:[#allocation8 + $0x4] sm:$0xf]  ;;  %v1952_v51 = vld [vmem:[#allocation10 + $0x8] sm:$0xf0] }
 0x1b8   :  { %v1867_v5 = vor.u32 %v2020_v13, %v1864_v0  ;;  %v772_v35 = vadd.f32 %v3007_v14, %v743_v26  ;;  %v1955_v57 = vor.u32 %v2040_v28, %v1952_v51 }
 0x1b9   :  { %v3058_v7 = vpack.c.bf16 %v948_v43, %v946_v11  ;;  %v745_v11 = vadd.f32 %v3020_v39, %v3018_v21  ;;  %v1960_v39 = vld [vmem:[#allocation10 + $0x18] sm:$0x10]  ;;  %v802_v47 = vpop.f32.mrf.mxu0 }
 0x1ba   :  { %1397 = vmatpush.bf16.msra.mxu3 %v1875_v23  ;;  %v1963_v20 = vor.u32 %v2042_v50, %v1960_v39 }
 0x1bb   :  { %1853 = vmatmul.msk.bf16.gmra.mxu1 %vm181_vm0, %v3058_v7  ;;  %1857 = vmatmul.msk.bf16.gmra.mxu2 %vm181_vm0, %v3058_v7  ;;  %v774_v24 = vadd.f32 %v3011_v63, %v745_v11 }
 0x1bc   :  { %v1475_v63 = vand.u32 %v1963_v20, %v2733_v62 }
 0x1be   :  { %v904_v1 = vpop.f32.mrf.mxu3  ;;  %v931_v56 = vpop.f32.mrf.mxu2  ;;  %1398 = vmatpush.bf16.msra.mxu3 %v1867_v5  ;;  %1512 = vmatpush.bf16.msra.mxu1 %v1475_v63 }
 0x1bf   :  { %v951_v41 = vmul.f32 %v904_v1, %v769_v44  ;;  %v950_v43 = vmul.f32 %v931_v56, %v825_v25  ;;  %v1958_v44 = vld [vmem:[#allocation10 + $0x10] sm:$0xf] }
 0x1c0   :  { %v1959_v21 = vor.u32 %v2043_v3, %v1958_v44 }
 0x1c1   :  { %v3066_v37 = vpack.c.bf16 %v951_v41, %v949_v53  ;;  %v801_v53 = vadd.f32 %v800_v38, %v3028_v32  ;;  %v803_v41 = vadd.f32 %v802_v47, %v3028_v32  ;;  %v2041_v32 = vld [vmem:[#allocation10 + $0x4] sm:$0xf0] }
 0x1c2   :  { %v1472_v14 = vand.u32 %v1959_v21, %v2733_v62  ;;  %v1950_v62 = vld [vmem:[#allocation10] sm:$0xf]  ;;  %1513 = vmatpush.bf16.msra.mxu1 %v1955_v57 }
 0x1c3   :  { %1115 = vmatmul.bf16.gmra.mxu0 %v3066_v37  ;;  %1173 = vmatmul.bf16.gmra.mxu3 %v3066_v37  ;;  %v830_v59 = vadd.f32 %v829_v36, %v801_v53  ;;  %v832_v31 = vadd.f32 %v831_v52, %v803_v41  ;;  %v1951_v58 = vor.u32 %v2041_v32, %v1950_v62 }
 0x1c4   :  { %1483 = vmatpush.bf16.msra.mxu0 %v1472_v14 }
 0x1c6   :  { %v907_v45 = vpop.f32.mrf.mxu3  ;;  %v933_v8 = vpop.f32.mrf.mxu2 }
 0x1c7   :  { %v952_v6 = vmul.f32 %v933_v8, %v827_v30  ;;  %v953_v33 = vmul.f32 %v907_v45, %v772_v35 }
 0x1c8   :  { %1484 = vmatpush.bf16.msra.mxu0 %v1951_v58 }
 0x1c9   :  { %v982_v40 = vpack.c.bf16 %v952_v6, %v950_v43 }
 0x1cb   :  { %1854 = vmatmul.msk.bf16.gmra.mxu1 %vm181_vm0, %v982_v40  ;;  %1858 = vmatmul.msk.bf16.gmra.mxu2 %vm181_vm0, %v982_v40 }
 0x1ce   :  { %v909_v54 = vpop.f32.mrf.mxu3  ;;  %v936_v17 = vpop.f32.mrf.mxu2 }
 0x1cf   :  { %v955_v1 = vmul.f32 %v909_v54, %v774_v24  ;;  %v954_v56 = vmul.f32 %v936_v17, %v830_v59 }
 0x1d1   :  { %v983_v42 = vpack.c.bf16 %v955_v1, %v953_v33 }
 0x1d3   :  { %1120 = vmatmul.bf16.gmra.mxu0 %v983_v42  ;;  %1178 = vmatmul.bf16.gmra.mxu3 %v983_v42 }
 0x1d6   :  { %v938_v29 = vpop.f32.mrf.mxu2 }
 0x1d7   :  { %v956_v2 = vmul.f32 %v938_v29, %v832_v31 }
 0x1d9   :  { %v984_v9 = vpack.c.bf16 %v956_v2, %v954_v56 }
 0x1db   :  { %1855 = vmatmul.msk.bf16.gmra.mxu1 %vm181_vm0, %v984_v9  ;;  %1859 = vmatmul.msk.bf16.gmra.mxu2 %vm181_vm0, %v984_v9 }
 0x1e3   :  { %1341 = vmatmul.bf16.vlgmr.msrb.gmra.mxu0 %v3030_v15  ;;  %1399 = vmatmul.bf16.vlgmr.msra.gmra.mxu3 %v3030_v15 }
 0x1eb   :  { %1940 = vmatmul.msk.bf16.vlgmr.msrb.gmra.mxu1 %vm181_vm0, %v3040_v49  ;;  %1944 = vmatmul.msk.bf16.vlgmr.msra.gmra.mxu2 %vm181_vm0, %v3040_v49 }
 0x1f3   :  { %1346 = vmatmul.bf16.gmra.mxu0 %v3048_v34  ;;  %1404 = vmatmul.bf16.gmra.mxu3 %v3048_v34 }
 0x1fb   :  { %1941 = vmatmul.msk.bf16.gmra.mxu1 %vm181_vm0, %v3058_v7  ;;  %1945 = vmatmul.msk.bf16.gmra.mxu2 %vm181_vm0, %v3058_v7 }
 0x203   :  { %1351 = vmatmul.bf16.gmra.mxu0 %v3066_v37  ;;  %1409 = vmatmul.bf16.gmra.mxu3 %v3066_v37 }
 0x20b   :  { %1942 = vmatmul.msk.bf16.gmra.mxu1 %vm181_vm0, %v982_v40  ;;  %1946 = vmatmul.msk.bf16.gmra.mxu2 %vm181_vm0, %v982_v40 }
 0x213   :  { %1356 = vmatmul.bf16.gmra.mxu0 %v983_v42  ;;  %1414 = vmatmul.bf16.gmra.mxu3 %v983_v42 }
 0x21b   :  { %1943 = vmatmul.msk.bf16.gmra.mxu1 %vm181_vm0, %v984_v9  ;;  %1947 = vmatmul.msk.bf16.gmra.mxu2 %vm181_vm0, %v984_v9 }
 0x220   :  { %v1106_v15 = vpop.f32.mrf.mxu0 }
 0x223   :  { %1964 = vmatmul.msk.bf16.vlgmr.msra.gmra.mxu0 %vm860_vm7, %v2943_v16 }
 0x226   :  { %v1164_v49 = vpop.f32.mrf.mxu3 }
 0x228   :  { %v1108_v34 = vpop.f32.mrf.mxu0  ;;  %v1135_v7 = vpop.f32.mrf.mxu1 }
 0x229   :  { %v3106_v60 = vadd.f32 %v1135_v7, %v1106_v15 }
 0x22b   :  { %1968 = vmatmul.msk.bf16.vlgmr.msra.gmra.mxu1 %vm860_vm7, %v2943_v16 }
 0x22e   :  { %v1166_v37 = vpop.f32.mrf.mxu3  ;;  %v1193_v55 = vpop.f32.mrf.mxu2 }
 0x22f   :  { %v3110_v46 = vadd.f32 %v1193_v55, %v1164_v49 }
 0x230   :  { %v1111_v18 = vpop.f32.mrf.mxu0  ;;  %v1137_v48 = vpop.f32.mrf.mxu1 }
 0x231   :  { %v3112_v4 = vadd.f32 %v1137_v48, %v1108_v34 }
 0x233   :  { %1965 = vmatmul.msk.bf16.gmra.mxu0 %vm860_vm7, %v2955_v19 }
 0x236   :  { %v1169_v38 = vpop.f32.mrf.mxu3  ;;  %v1195_v45 = vpop.f32.mrf.mxu2 }
 0x237   :  { %v3116_v25 = vadd.f32 %v1195_v45, %v1166_v37  ;;  %v2121_v45 = vld [vmem:[%s3239_s1] sm:$0xff] }
 0x238   :  { %v1113_v23 = vpop.f32.mrf.mxu0  ;;  %v1140_v30 = vpop.f32.mrf.mxu1 }
 0x239   :  { %v3118_v13 = vadd.f32 %v1140_v30, %v1111_v18 }
 0x23b   :  { %1969 = vmatmul.msk.bf16.gmra.mxu1 %vm860_vm7, %v2955_v19 }
 0x23e   :  { %v1171_v16 = vpop.f32.mrf.mxu3  ;;  %v1198_v0 = vpop.f32.mrf.mxu2 }
 0x23f   :  { %v3122_v26 = vadd.f32 %v1198_v0, %v1169_v38  ;;  %v3301_v0 = vunpack.c.l.bf16 %v2378_v10 }
 0x240   :  { %v1116_v8 = vpop.f32.mrf.mxu0  ;;  %v1142_v11 = vpop.f32.mrf.mxu1 }
 0x241   :  { %v3124_v43 = vadd.f32 %v1142_v11, %v1113_v23  ;;  %v132_v23 = vunpack.c.h.bf16 %v2121_v45 }
 0x243   :  { %1966 = vmatmul.msk.bf16.gmra.mxu0 %vm860_vm7, %v2967_v27 }
 0x246   :  { %v1174_v6 = vpop.f32.mrf.mxu3  ;;  %v1200_v5 = vpop.f32.mrf.mxu2 }
 0x247   :  { %v3128_v36 = vadd.f32 %v1200_v5, %v1171_v16  ;;  %v1536_v5 = vmul.f32 %v3110_v46, %v132_v23 }
 0x248   :  { %v1118_v40 = vpop.f32.mrf.mxu0  ;;  %v1145_v35 = vpop.f32.mrf.mxu1 }
 0x249   :  { %v3130_v24 = vadd.f32 %v1145_v35, %v1116_v8  ;;  %v1535_v8 = vmul.f32 %v3106_v60, %v3301_v0  ;;  %v3302_v60 = vunpack.c.l.bf16 %v2383_v12  ;;  %v2124_v0 = vld [vmem:[%s3239_s1 + $0x18] sm:$0xff] }
 0x24b   :  { %1970 = vmatmul.msk.bf16.gmra.mxu1 %vm860_vm7, %v2967_v27 }
 0x24e   :  { %v1203_v19 = vpop.f32.mrf.mxu2  ;;  %v1176_v54 = vpop.f32.mrf.mxu3 }
 0x24f   :  { %v3134_v3 = vadd.f32 %v1203_v19, %v1174_v6 }
 0x250   :  { %v1121_v44 = vpop.f32.mrf.mxu0  ;;  %v1147_v50 = vpop.f32.mrf.mxu1 }
 0x251   :  { %v3136_v21 = vadd.f32 %v1147_v50, %v1118_v40 }
 0x253   :  { %1967 = vmatmul.msk.bf16.gmra.mxu0 %vm860_vm7, %v2979_v61 }
 0x256   :  { %v1205_v39 = vpop.f32.mrf.mxu2  ;;  %v1179_v17 = vpop.f32.mrf.mxu3 }
 0x257   :  { %v3140_v1 = vadd.f32 %v1205_v39, %v1176_v54  ;;  %v2122_v39 = vld [vmem:[%s3239_s1 + $0x8] sm:$0xff] }
 0x258   :  { %v1123_v33 = vpop.f32.mrf.mxu0  ;;  %v1150_v20 = vpop.f32.mrf.mxu1 }
 0x259   :  { %v3142_v47 = vadd.f32 %v1150_v20, %v1121_v44 }
 0x25b   :  { %1971 = vmatmul.msk.bf16.gmra.mxu1 %vm860_vm7, %v2979_v61 }
 0x25e   :  { %v1208_v27 = vpop.f32.mrf.mxu2  ;;  %v1181_v41 = vpop.f32.mrf.mxu3 }
 0x25f   :  { %v3146_v42 = vadd.f32 %v1208_v27, %v1179_v17  ;;  %v1537_v27 = vmul.f32 %v3112_v4, %v3302_v60  ;;  %v3303_v4 = vunpack.c.l.bf16 %v2414_v22 }
 0x260   :  { %v1342_v14 = vpop.f32.mrf.mxu0  ;;  %v1152_v63 = vpop.f32.mrf.mxu1 }
 0x261   :  { %v3148_v53 = vadd.f32 %v1152_v63, %v1123_v33  ;;  %v134_v33 = vunpack.c.h.bf16 %v2122_v39 }
 0x263   :  { %v1538_v63 = vmul.f32 %v3116_v25, %v134_v33  ;;  %v2125_v33 = vld [vmem:[%s3239_s1 + $0x20] sm:$0xff] }
 0x266   :  { %v1210_v52 = vpop.f32.mrf.mxu2  ;;  %v1400_v15 = vpop.f32.mrf.mxu3 }
 0x267   :  { %v3150_v31 = vadd.f32 %v1210_v52, %v1181_v41 }
 0x268   :  { %v1344_v59 = vpop.f32.mrf.mxu0  ;;  %v1371_v29 = vpop.f32.mrf.mxu1 }
 0x269   :  { %v1372_v38 = vadd.f32 %v1371_v29, %v1342_v14 }
 0x26e   :  { %v1429_v49 = vpop.f32.mrf.mxu2  ;;  %v1402_v55 = vpop.f32.mrf.mxu3 }
 0x26f   :  { %v1430_v11 = vadd.f32 %v1429_v49, %v1400_v15  ;;  %v2123_v49 = vld [vmem:[%s3239_s1 + $0x10] sm:$0xff] }
 0x270   :  { %v1347_v56 = vpop.f32.mrf.mxu0  ;;  %v1373_v2 = vpop.f32.mrf.mxu1 }
 0x271   :  { %v1374_v50 = vadd.f32 %v1373_v2, %v1344_v59 }
 0x276   :  { %v1431_v18 = vpop.f32.mrf.mxu2  ;;  %v1405_v40 = vpop.f32.mrf.mxu3 }
 0x277   :  { %v1432_v14 = vadd.f32 %v1431_v18, %v1402_v55  ;;  %v1539_v55 = vmul.f32 %v3118_v13, %v3303_v4  ;;  %v3304_v13 = vld [vmem:[#allocation18_spill] sm:$0xff] }
 0x278   :  { %v1349_v9 = vpop.f32.mrf.mxu0  ;;  %v1376_v62 = vpop.f32.mrf.mxu1 }
 0x279   :  { %v1377_v59 = vadd.f32 %v1376_v62, %v1347_v56 }
 0x27e   :  { %v1434_v44 = vpop.f32.mrf.mxu2  ;;  %v1407_v29 = vpop.f32.mrf.mxu3 }
 0x27f   :  { %v1435_v18 = vadd.f32 %v1434_v44, %v1405_v40  ;;  %v3305_v40 = vunpack.c.l.bf16 %v3304_v13 }
 0x280   :  { %v3152_v32 = vpop.f32.mrf.mxu0  ;;  %v1378_v61 = vpop.f32.mrf.mxu1 }
 0x286   :  { %v1436_v15 = vpop.f32.mrf.mxu2 }
 0x287   :  { %v1437_v44 = vadd.f32 %v1436_v15, %v1407_v29 }
 0x288   :  { %v3154_v28 = vpop.f32.mrf.mxu0  ;;  %v3156_v58 = vpop.f32.mrf.mxu1 }
 0x28e   :  { %v1439_v22 = vpop.f32.mrf.mxu2 }
 0x290   :  { %v3158_v51 = vpop.f32.mrf.mxu0  ;;  %v3160_v57 = vpop.f32.mrf.mxu1 }
 0x298   :  { %v3162_v34 = vpop.f32.mrf.mxu0  ;;  %v3164_v7 = vpop.f32.mrf.mxu1 }
 0x2a0   :  { %v1486_v37 = vpop.f32.mrf.mxu0  ;;  %v3166_v48 = vpop.f32.mrf.mxu1 }
 0x2a1   :  { %v1551_v30 = vmul.f32 %v1486_v37, %v1372_v38  ;;  %v136_v37 = vunpack.c.h.bf16 %v2123_v49 }
 0x2a3   :  { %v1567_v35 = vadd.f32 %v1551_v30, %v1535_v8  ;;  %v1540_v56 = vmul.f32 %v3122_v26, %v136_v37  ;;  %v1379_v30 = vadd.f32 %v1378_v61, %v1349_v9  ;;  %v138_v8 = vunpack.c.h.bf16 %v2124_v0  ;;  %v3308_v37 = vld [vmem:[#allocation17_spill] sm:$0xff]  ;;  %v3310_v0 = vld [vmem:[#allocation19_spill] sm:$0xff] }
 0x2a5   :  { %v1542_v9 = vmul.f32 %v3128_v36, %v138_v8  ;;  %v3311_v8 = vunpack.c.l.bf16 %v3310_v0 }
 0x2a8   :  { %v1488_v16 = vpop.f32.mrf.mxu0  ;;  %v1515_v6 = vpop.f32.mrf.mxu1 }
 0x2a9   :  { %v1552_v19 = vmul.f32 %v1515_v6, %v1430_v11  ;;  %v1553_v17 = vmul.f32 %v1488_v16, %v1374_v50  ;;  %v1410_v11 = vpop.f32.mrf.mxu3 }
 0x2ab   :  { %v1568_v54 = vadd.f32 %v1552_v19, %v1536_v5  ;;  %v1569_v41 = vadd.f32 %v1553_v17, %v1537_v27  ;;  %v1541_v19 = vmul.f32 %v3124_v43, %v3305_v40  ;;  %v3306_v43 = vld [vmem:[#allocation16_spill] sm:$0xff] }
 0x2ac   :  { %v3307_v27 = vunpack.c.l.bf16 %v3306_v43 }
 0x2ad   :  { %v1583_v20 = vpack.c.bf16 %v1568_v54, %v1567_v35  ;;  %v1382_v54 = vadd.f32 %v3156_v58, %v3152_v32 }
 0x2af   :  { %1591 = vst [vmem:[#allocation11] sm:$0xff] %v1583_v20  ;;  %v140_v20 = vunpack.c.h.bf16 %v2125_v33 }
 0x2b0   :  { %v1491_v10 = vpop.f32.mrf.mxu0  ;;  %v1517_v46 = vpop.f32.mrf.mxu1 }
 0x2b1   :  { %v1554_v52 = vmul.f32 %v1517_v46, %v1432_v14  ;;  %v1555_v12 = vmul.f32 %v1491_v10, %v1377_v59  ;;  %v1543_v14 = vmul.f32 %v3130_v24, %v3307_v27  ;;  %v1440_v46 = vadd.f32 %v1439_v22, %v1410_v11  ;;  %v1412_v36 = vpop.f32.mrf.mxu3 }
 0x2b2   :  { %v1544_v32 = vmul.f32 %v3134_v3, %v140_v20  ;;  %v1384_v59 = vadd.f32 %v3160_v57, %v3154_v28  ;;  %v1547_v11 = vmul.f32 %v3142_v47, %v3311_v8 }
 0x2b3   :  { %v1570_v2 = vadd.f32 %v1554_v52, %v1538_v63  ;;  %v1571_v62 = vadd.f32 %v1555_v12, %v1539_v55  ;;  %v1441_v63 = vpop.f32.mrf.mxu2 }
 0x2b5   :  { %v1584_v38 = vpack.c.bf16 %v1570_v2, %v1569_v41  ;;  %v2126_v2 = vld [vmem:[%s3239_s1 + $0x28] sm:$0xff] }
 0x2b6   :  { %v142_v15 = vunpack.c.h.bf16 %v2126_v2 }
 0x2b7   :  { %1592 = vst [vmem:[#allocation11 + $0x8] sm:$0xff] %v1584_v38  ;;  %v3309_v38 = vunpack.c.l.bf16 %v3308_v37 }
 0x2b8   :  { %v1493_v45 = vpop.f32.mrf.mxu0  ;;  %v1520_v25 = vpop.f32.mrf.mxu1  ;;  %v1546_v55 = vmul.f32 %v3140_v1, %v142_v15 }
 0x2b9   :  { %v1556_v23 = vmul.f32 %v1520_v25, %v1435_v18  ;;  %v1557_v5 = vmul.f32 %v1493_v45, %v1379_v30  ;;  %v1545_v12 = vmul.f32 %v3136_v21, %v3309_v38  ;;  %v1442_v45 = vadd.f32 %v1441_v63, %v1412_v36  ;;  %v1415_v57 = vpop.f32.mrf.mxu3 }
 0x2bb   :  { %v1572_v16 = vadd.f32 %v1556_v23, %v1540_v56  ;;  %v1573_v61 = vadd.f32 %v1557_v5, %v1541_v19  ;;  %v1444_v25 = vpop.f32.mrf.mxu2  ;;  %v1387_v56 = vadd.f32 %v3164_v7, %v3158_v51  ;;  %v2127_v23 = vld [vmem:[%s3239_s1 + $0x30] sm:$0xff]  ;;  %v1389_v7 = vadd.f32 %v3166_v48, %v3162_v34 }
 0x2bc   :  { %v144_v30 = vunpack.c.h.bf16 %v2127_v23  ;;  %v1445_v1 = vadd.f32 %v1444_v25, %v1415_v57 }
 0x2bd   :  { %v1585_v6 = vpack.c.bf16 %v1572_v16, %v1571_v62 }
 0x2be   :  { %v1548_v5 = vmul.f32 %v3146_v42, %v144_v30 }
 0x2bf   :  { %1593 = vst [vmem:[#allocation11 + $0x10] sm:$0xff] %v1585_v6 }
 0x2c0   :  { %v1496_v35 = vpop.f32.mrf.mxu0  ;;  %v1522_v26 = vpop.f32.mrf.mxu1 }
 0x2c1   :  { %v1558_v50 = vmul.f32 %v1522_v26, %v1437_v44  ;;  %v1559_v10 = vmul.f32 %v1496_v35, %v1382_v54  ;;  %v1417_v40 = vpop.f32.mrf.mxu3  ;;  %v2128_v44 = vld [vmem:[%s3239_s1 + $0x38] sm:$0xff]  ;;  %s1605_s1 = sshll.u32 %s3248_s10, 4  ;;  %s1606_s1 = int_to_ptr.hbm [resolvable:$true] %s1605_s1 }
 0x2c2   :  { %v146_v26 = vunpack.c.h.bf16 %v2128_v44 }
 0x2c3   :  { %v1574_v39 = vadd.f32 %v1558_v50, %v1542_v9  ;;  %v1575_v58 = vadd.f32 %v1559_v10, %v1543_v14  ;;  %v1446_v19 = vpop.f32.mrf.mxu2 }
 0x2c4   :  { %v1447_v54 = vadd.f32 %v1446_v19, %v1417_v40  ;;  %v1550_v33 = vmul.f32 %v3150_v31, %v146_v26 }
 0x2c5   :  { %v1586_v17 = vpack.c.bf16 %v1574_v39, %v1573_v61  ;;  %v3312_v61 = vld [vmem:[#allocation20_spill] sm:$0xff] }
 0x2c6   :  { %v3313_v50 = vunpack.c.l.bf16 %v3312_v61 }
 0x2c7   :  { %1594 = vst [vmem:[#allocation11 + $0x18] sm:$0xff] %v1586_v17 }
 0x2c8   :  { %v1498_v60 = vpop.f32.mrf.mxu0  ;;  %v1525_v41 = vpop.f32.mrf.mxu1  ;;  %v1549_v42 = vmul.f32 %v3148_v53, %v3313_v50 }
 0x2c9   :  { %v1560_v52 = vmul.f32 %v1525_v41, %v1440_v46  ;;  %v1561_v24 = vmul.f32 %v1498_v60, %v1384_v59 }
 0x2cb   :  { %v1576_v29 = vadd.f32 %v1560_v52, %v1544_v32  ;;  %v1577_v18 = vadd.f32 %v1561_v24, %v1545_v12 }
 0x2cd   :  { %v1587_v49 = vpack.c.bf16 %v1576_v29, %v1575_v58 }
 0x2cf   :  { %1595 = vst [vmem:[#allocation11 + $0x20] sm:$0xff] %v1587_v49 }
 0x2d0   :  { %v1527_v3 = vpop.f32.mrf.mxu1  ;;  %v1501_v4 = vpop.f32.mrf.mxu0 }
 0x2d1   :  { %v1562_v28 = vmul.f32 %v1527_v3, %v1442_v45  ;;  %v1563_v16 = vmul.f32 %v1501_v4, %v1387_v56 }
 0x2d3   :  { %v1578_v62 = vadd.f32 %v1562_v28, %v1546_v55  ;;  %v1579_v22 = vadd.f32 %v1563_v16, %v1547_v11 }
 0x2d5   :  { %v1588_v21 = vpack.c.bf16 %v1578_v62, %v1577_v18 }
 0x2d7   :  { %1596 = vst [vmem:[#allocation11 + $0x28] sm:$0xff] %v1588_v21 }
 0x2d8   :  { %v1530_v6 = vpop.f32.mrf.mxu1  ;;  %v1503_v51 = vpop.f32.mrf.mxu0 }
 0x2d9   :  { %v1564_v35 = vmul.f32 %v1530_v6, %v1445_v1  ;;  %v1565_v9 = vmul.f32 %v1503_v51, %v1389_v7 }
 0x2db   :  { %v1580_v13 = vadd.f32 %v1564_v35, %v1548_v5  ;;  %v1581_v34 = vadd.f32 %v1565_v9, %v1549_v42 }
 0x2dd   :  { %v1589_v47 = vpack.c.bf16 %v1580_v13, %v1579_v22 }
 0x2df   :  { %1597 = vst [vmem:[#allocation11 + $0x30] sm:$0xff] %v1589_v47 }
 0x2e0   :  { %v1532_v39 = vpop.f32.mrf.mxu1 }
 0x2e1   :  { %v1566_v48 = vmul.f32 %v1532_v39, %v1447_v54 }
 0x2e3   :  { %v1582_v20 = vadd.f32 %v1566_v48, %v1550_v33 }
 0x2e5   :  { %v1590_v17 = vpack.c.bf16 %v1582_v20, %v1581_v34 }
 0x2e7   :  { %1598 = vst [vmem:[#allocation11 + $0x38] sm:$0xff] %v1590_v17 }
 0x2e8   :  { %1611 = dma.vmem_to_hbm [thread:$0]  %s1604_s3, 1024, %s1606_s1, [#allocation4], %s2282_s21, %s2282_s21, %s2283_s22  }
 0x2e9   :  { %2279 = dma.done.wait [#allocation4], 1024  }
 0x2ea   :  { %2280 = vsyncadd [#allocation4], 4294966272 }
 0x2eb   :  { %1616 = vsyncpa [#allocation3], 1 }
 0x2ec   :  { %1617 = vsyncpa [#allocation6], 1 }
 0x2ed   :  { %1618 = vsyncpa [#allocation9], 1 }
 0x2ee   :  { %1619 = vsyncpa [#allocation4], 1 }

</bundles_post_ra>
